<compile_context>
chip_gen: v7x
topology: tpu7x:2x2x1
jax: 0.10.0
libtpu: 0.0.40
codegen_flags: <defaults>
</compile_context>

<pallas_src>
import functools

import jax
import jax.numpy as jnp
from jax.experimental import pallas as pl
from jax.experimental.pallas import tpu as pltpu

_LANE = 128
_MAX_OUT_ROWS = 256  # bounds in-kernel unrolling of the H recurrence


def _avgpool_pair_kernel(x1_ref, x2_ref, o1_ref, o2_ref, *, K, Ho, Wo):
    """Average-pool two (Hb, W, L) tiles with a KxK window over (H, W), stride 1.

    L is the lane axis (independent planes).  The pool is separable:
      * W pass: K shifted ref-loads at sublane offsets, summed in f32 (VPU adds,
        loads on the vld slots -- no XLU rotates).
      * H pass: sliding-window recurrence along the leading axis (free vreg addressing).
    """
    inv = jnp.float32(1.0 / (K * K))

    def pool(x_ref, o_ref):
        # --- W (sublane) pass: row[h] = sum_{dj<K} x[h, dj:dj+Wo, :] ---------------
        row = x_ref[:, 0:Wo, :].astype(jnp.float32)
        for dj in range(1, K):
            row = row + x_ref[:, dj:dj + Wo, :].astype(jnp.float32)

        # --- H (leading-axis) pass: sliding-window recurrence, f32 accumulation ----
        acc = row[0]
        for di in range(1, K):
            acc = acc + row[di]
        o_ref[0, :, :] = (acc * inv).astype(o_ref.dtype)
        for i in range(1, Ho):
            acc = acc + (row[i + K - 1] - row[i - 1])
            o_ref[i, :, :] = (acc * inv).astype(o_ref.dtype)

    pool(x1_ref, o1_ref)
    pool(x2_ref, o2_ref)


def _tpu_params():
    """(vmem_limit_bytes, num_tensorcores) for the local TPU, conservative fallbacks."""
    vmem_phys = 64 << 20          # v7x per-TC physical VMEM (smallest in the fleet)
    num_tc = 1
    try:
        kind = jax.devices()[0].device_kind.lower()
        if ("v5 lite" in kind) or ("v5e" in kind) or ("v6" in kind):
            vmem_phys = 128 << 20   # v5e / v6e: 128 MiB VMEM, single TensorCore
        if ("v7" in kind) or ("v5p" in kind) or ("v4" in kind):
            num_tc = 2              # 2 TensorCores per chip -> keep >=2 parallel grid steps
    except Exception:
        pass
    vmem_limit = min(vmem_phys - (16 << 20), 100 << 20)  # leave headroom below physical
    return vmem_limit, num_tc


def transformer_block(x1, x2, kernel_size=10):
    """Equivalent of TransformerBlock.forward(x1, x2) -> (avg_pool(x1), avg_pool(x2))."""
    assert x1.shape == x2.shape, "kernel fuses both pools; expects matching shapes"
    assert x1.dtype == x2.dtype
    N, C, H, W = x1.shape
    K = kernel_size
    Ho, Wo = H - K + 1, W - K + 1
    assert Ho > 0 and Wo > 0
    P = N * C
    itemsize = jnp.dtype(x1.dtype).itemsize

    vmem_limit, num_tc = _tpu_params()
    # Per-input block byte cap.  Live VMEM per grid step is roughly:
    #   2 inputs x (2 x in_block [double buffer] + ~in_block f32 `row` temp)
    # + 2 outputs x (2 x out_block)              ~= 10-12 x in_block,
    # so cap one input block at vmem_limit/12 and hand the limit to the compiler.
    in_cap = vmem_limit // 12

    # Planes -> lane axis.  One layout pass per tensor; no concat, and (for P <= 128)
    # no lane padding.
    # TODO(synk): absorb this transpose into the kernel (pltpu.einshape on a (Pblk,H,W)
    # input block) to drop one full HBM read+write per tensor on mem-bound v5e/v6e.
    x1t = jnp.transpose(x1.reshape(P, H, W), (1, 2, 0))   # (H, W, P)
    x2t = jnp.transpose(x2.reshape(P, H, W), (1, 2, 0))

    # ---- H strips: only when a single minimum-width lane tile would exceed the cap ----
    min_lane = min(P, _LANE)
    rows_cap = max(K, in_cap // (W * min_lane * itemsize))        # input rows per block
    strip_out = max(1, min(Ho, rows_cap - (K - 1), _MAX_OUT_ROWS))
    n_strips = -(-Ho // strip_out)
    strip_in = strip_out + K - 1                                  # tallest strip (input rows)

    # ---- Lane tiling ----
    if P <= _LANE:
        lane_block, P_pad = P, P        # full-extent last dim: legal, no lane padding
    else:
        tiles = -(-P // _LANE)
        cap_tiles = max(1, in_cap // (strip_in * W * itemsize * _LANE))
        if num_tc >= 2 and tiles >= 2:
            # keep >= 2 evenly sized grid steps so both TensorCores get work
            cap_tiles = max(1, min(cap_tiles, tiles // 2))
        # largest block width (in 128-lane tiles) that divides the tile count exactly
        t = max(d for d in range(1, cap_tiles + 1) if tiles % d == 0)
        lane_block = t * _LANE
        P_pad = tiles * _LANE
        x1t = jnp.pad(x1t, ((0, 0), (0, 0), (0, P_pad - P)))
        x2t = jnp.pad(x2t, ((0, 0), (0, 0), (0, P_pad - P)))
    lane_steps = P_pad // lane_block

    compiler_params = pltpu.CompilerParams(
        dimension_semantics=("parallel",),
        vmem_limit_bytes=vmem_limit,
    )

    def pool_pair(x1s, x2s, ho_b):
        hb = ho_b + K - 1
        out_sd = jax.ShapeDtypeStruct((ho_b, Wo, P_pad), x1.dtype)
        in_spec = pl.BlockSpec((hb, W, lane_block), lambda i: (0, 0, i))
        out_spec = pl.BlockSpec((ho_b, Wo, lane_block), lambda i: (0, 0, i))
        return pl.pallas_call(
            functools.partial(_avgpool_pair_kernel, K=K, Ho=ho_b, Wo=Wo),
            out_shape=(out_sd, out_sd),
            grid=(lane_steps,),
            in_specs=[in_spec, in_spec],
            out_specs=(out_spec, out_spec),
            compiler_params=compiler_params,
        )(x1s, x2s)

    if n_strips == 1:
        y1t, y2t = pool_pair(x1t, x2t, Ho)
    else:
        # Fallback for very large images: overlapping H strips, one pallas_call each.
        # TODO(synk): replace with an in-kernel halo pipeline (manual make_async_copy)
        # to avoid the per-strip slice copies in HBM.
        outs1, outs2 = [], []
        for s in range(n_strips):
            h0 = s * strip_out
            ho_b = min(strip_out, Ho - h0)
            x1s = jax.lax.slice_in_dim(x1t, h0, h0 + ho_b + K - 1, axis=0)
            x2s = jax.lax.slice_in_dim(x2t, h0, h0 + ho_b + K - 1, axis=0)
            y1s, y2s = pool_pair(x1s, x2s, ho_b)
            outs1.append(y1s)
            outs2.append(y2s)
        y1t = jnp.concatenate(outs1, axis=0)
        y2t = jnp.concatenate(outs2, axis=0)

    if P_pad != P:
        y1t = y1t[:, :, :P]
        y2t = y2t[:, :, :P]
    y1 = jnp.transpose(y1t, (2, 0, 1)).reshape(N, C, Ho, Wo)
    y2 = jnp.transpose(y2t, (2, 0, 1)).reshape(N, C, Ho, Wo)
    return y1, y2


def _avgpool_ref(x, K):
    # Pure-JAX reference (lax.reduce_window) for correctness checking.
    s = jax.lax.reduce_window(
        x, 0.0, jax.lax.add,
        window_dimensions=(1, 1, K, K),
        window_strides=(1, 1, 1, 1),
        padding="VALID",
    )
    return s / float(K * K)


if __name__ == "__main__":
    key = jax.random.PRNGKey(0)
    k1, k2 = jax.random.split(key)
    # Small shapes consistent with kernel_size=10 (H, W must be >= 10).
    x1 = jax.random.normal(k1, (2, 4, 16, 16), dtype=jnp.float32)
    x2 = jax.random.normal(k2, (2, 4, 16, 16), dtype=jnp.float32)

    y1, y2 = transformer_block(x1, x2, kernel_size=10)
    jax.block_until_ready((y1, y2))

    r1 = _avgpool_ref(x1, 10)
    r2 = _avgpool_ref(x2, 10)
    assert y1.shape == (2, 4, 7, 7) and y2.shape == (2, 4, 7, 7)
    assert jnp.allclose(y1, r1, atol=1e-5, rtol=1e-5)
    assert jnp.allclose(y2, r2, atol=1e-5, rtol=1e-5)

    print("KERNEL_OK")
</pallas_src>

<mosaic_0001>
module attributes {stable_mosaic.version = 11 : i64} {
  func.func @_avgpool_pair_kernel(%arg0: i32, %arg1: memref<16x16x8xf32, #tpu.memory_space<vmem>>, %arg2: memref<16x16x8xf32, #tpu.memory_space<vmem>>, %arg3: memref<7x7x8xf32, #tpu.memory_space<vmem>>, %arg4: memref<7x7x8xf32, #tpu.memory_space<vmem>>) attributes {dimension_semantics = [#tpu.dimension_semantics<parallel>], iteration_bounds = array<i64: 1>, scalar_prefetch = 0 : i64, scratch_operands = 0 : i64, tpu.core_type = #tpu.core_type<tc>, window_params = [{transform_indices = @transform_0, window_bounds = array<i64: 16, 16, 8>}, {transform_indices = @transform_1, window_bounds = array<i64: 16, 16, 8>}, {transform_indices = @transform_2, window_bounds = array<i64: 7, 7, 8>}, {transform_indices = @transform_3, window_bounds = array<i64: 7, 7, 8>}]} {
    %c0 = arith.constant 0 : index
    %c0_0 = arith.constant 0 : index
    %c0_1 = arith.constant 0 : index
    %0 = vector.load %arg1[%c0, %c0_0, %c0_1] : memref<16x16x8xf32, #tpu.memory_space<vmem>>, vector<16x7x8xf32>
    %c0_2 = arith.constant 0 : index
    %c1 = arith.constant 1 : index
    %c0_3 = arith.constant 0 : index
    %1 = vector.load %arg1[%c0_2, %c1, %c0_3] : memref<16x16x8xf32, #tpu.memory_space<vmem>>, vector<16x7x8xf32>
    %2 = arith.addf %0, %1 : vector<16x7x8xf32>
    %c0_4 = arith.constant 0 : index
    %c2 = arith.constant 2 : index
    %c0_5 = arith.constant 0 : index
    %3 = vector.load %arg1[%c0_4, %c2, %c0_5] : memref<16x16x8xf32, #tpu.memory_space<vmem>>, vector<16x7x8xf32>
    %4 = arith.addf %2, %3 : vector<16x7x8xf32>
    %c0_6 = arith.constant 0 : index
    %c3 = arith.constant 3 : index
    %c0_7 = arith.constant 0 : index
    %5 = vector.load %arg1[%c0_6, %c3, %c0_7] : memref<16x16x8xf32, #tpu.memory_space<vmem>>, vector<16x7x8xf32>
    %6 = arith.addf %4, %5 : vector<16x7x8xf32>
    %c0_8 = arith.constant 0 : index
    %c4 = arith.constant 4 : index
    %c0_9 = arith.constant 0 : index
    %7 = vector.load %arg1[%c0_8, %c4, %c0_9] : memref<16x16x8xf32, #tpu.memory_space<vmem>>, vector<16x7x8xf32>
    %8 = arith.addf %6, %7 : vector<16x7x8xf32>
    %c0_10 = arith.constant 0 : index
    %c5 = arith.constant 5 : index
    %c0_11 = arith.constant 0 : index
    %9 = vector.load %arg1[%c0_10, %c5, %c0_11] : memref<16x16x8xf32, #tpu.memory_space<vmem>>, vector<16x7x8xf32>
    %10 = arith.addf %8, %9 : vector<16x7x8xf32>
    %c0_12 = arith.constant 0 : index
    %c6 = arith.constant 6 : index
    %c0_13 = arith.constant 0 : index
    %11 = vector.load %arg1[%c0_12, %c6, %c0_13] : memref<16x16x8xf32, #tpu.memory_space<vmem>>, vector<16x7x8xf32>
    %12 = arith.addf %10, %11 : vector<16x7x8xf32>
    %c0_14 = arith.constant 0 : index
    %c7 = arith.constant 7 : index
    %c0_15 = arith.constant 0 : index
    %13 = vector.load %arg1[%c0_14, %c7, %c0_15] : memref<16x16x8xf32, #tpu.memory_space<vmem>>, vector<16x7x8xf32>
    %14 = arith.addf %12, %13 : vector<16x7x8xf32>
    %c0_16 = arith.constant 0 : index
    %c8 = arith.constant 8 : index
    %c0_17 = arith.constant 0 : index
    %15 = vector.load %arg1[%c0_16, %c8, %c0_17] : memref<16x16x8xf32, #tpu.memory_space<vmem>>, vector<16x7x8xf32>
    %16 = arith.addf %14, %15 : vector<16x7x8xf32>
    %c0_18 = arith.constant 0 : index
    %c9 = arith.constant 9 : index
    %c0_19 = arith.constant 0 : index
    %17 = vector.load %arg1[%c0_18, %c9, %c0_19] : memref<16x16x8xf32, #tpu.memory_space<vmem>>, vector<16x7x8xf32>
    %18 = arith.addf %16, %17 : vector<16x7x8xf32>
    %19 = vector.extract_strided_slice %18 {offsets = [0, 0, 0], sizes = [1, 7, 8], strides = [1, 1, 1]} : vector<16x7x8xf32> to vector<1x7x8xf32>
    %20 = vector.shape_cast %19 : vector<1x7x8xf32> to vector<7x8xf32>
    %21 = vector.extract_strided_slice %18 {offsets = [1, 0, 0], sizes = [1, 7, 8], strides = [1, 1, 1]} : vector<16x7x8xf32> to vector<1x7x8xf32>
    %22 = vector.shape_cast %21 : vector<1x7x8xf32> to vector<7x8xf32>
    %23 = arith.addf %20, %22 : vector<7x8xf32>
    %24 = vector.extract_strided_slice %18 {offsets = [2, 0, 0], sizes = [1, 7, 8], strides = [1, 1, 1]} : vector<16x7x8xf32> to vector<1x7x8xf32>
    %25 = vector.shape_cast %24 : vector<1x7x8xf32> to vector<7x8xf32>
    %26 = arith.addf %23, %25 : vector<7x8xf32>
    %27 = vector.extract_strided_slice %18 {offsets = [3, 0, 0], sizes = [1, 7, 8], strides = [1, 1, 1]} : vector<16x7x8xf32> to vector<1x7x8xf32>
    %28 = vector.shape_cast %27 : vector<1x7x8xf32> to vector<7x8xf32>
    %29 = arith.addf %26, %28 : vector<7x8xf32>
    %30 = vector.extract_strided_slice %18 {offsets = [4, 0, 0], sizes = [1, 7, 8], strides = [1, 1, 1]} : vector<16x7x8xf32> to vector<1x7x8xf32>
    %31 = vector.shape_cast %30 : vector<1x7x8xf32> to vector<7x8xf32>
    %32 = arith.addf %29, %31 : vector<7x8xf32>
    %33 = vector.extract_strided_slice %18 {offsets = [5, 0, 0], sizes = [1, 7, 8], strides = [1, 1, 1]} : vector<16x7x8xf32> to vector<1x7x8xf32>
    %34 = vector.shape_cast %33 : vector<1x7x8xf32> to vector<7x8xf32>
    %35 = arith.addf %32, %34 : vector<7x8xf32>
    %36 = vector.extract_strided_slice %18 {offsets = [6, 0, 0], sizes = [1, 7, 8], strides = [1, 1, 1]} : vector<16x7x8xf32> to vector<1x7x8xf32>
    %37 = vector.shape_cast %36 : vector<1x7x8xf32> to vector<7x8xf32>
    %38 = arith.addf %35, %37 : vector<7x8xf32>
    %39 = vector.extract_strided_slice %18 {offsets = [7, 0, 0], sizes = [1, 7, 8], strides = [1, 1, 1]} : vector<16x7x8xf32> to vector<1x7x8xf32>
    %40 = vector.shape_cast %39 : vector<1x7x8xf32> to vector<7x8xf32>
    %41 = arith.addf %38, %40 : vector<7x8xf32>
    %42 = vector.extract_strided_slice %18 {offsets = [8, 0, 0], sizes = [1, 7, 8], strides = [1, 1, 1]} : vector<16x7x8xf32> to vector<1x7x8xf32>
    %43 = vector.shape_cast %42 : vector<1x7x8xf32> to vector<7x8xf32>
    %44 = arith.addf %41, %43 : vector<7x8xf32>
    %45 = vector.extract_strided_slice %18 {offsets = [9, 0, 0], sizes = [1, 7, 8], strides = [1, 1, 1]} : vector<16x7x8xf32> to vector<1x7x8xf32>
    %46 = vector.shape_cast %45 : vector<1x7x8xf32> to vector<7x8xf32>
    %47 = arith.addf %44, %46 : vector<7x8xf32>
    %cst = arith.constant 0.00999999977 : f32
    %48 = vector.broadcast %cst : f32 to vector<7x8xf32>
    %49 = arith.mulf %47, %48 : vector<7x8xf32>
    %c0_20 = arith.constant 0 : index
    %c0_21 = arith.constant 0 : index
    %c0_22 = arith.constant 0 : index
    %50 = vector.load %arg3[%c0_20, %c0_21, %c0_22] : memref<7x7x8xf32, #tpu.memory_space<vmem>>, vector<1x7x8xf32>
    %51 = vector.shape_cast %50 : vector<1x7x8xf32> to vector<7x8xf32>
    %52 = vector.shape_cast %49 : vector<7x8xf32> to vector<1x7x8xf32>
    tpu.vector_store %arg3[%c0_20, %c0_21, %c0_22], %52 {strides = array<i32>} : memref<7x7x8xf32, #tpu.memory_space<vmem>>, vector<1x7x8xf32>,
    %53 = vector.extract_strided_slice %18 {offsets = [10, 0, 0], sizes = [1, 7, 8], strides = [1, 1, 1]} : vector<16x7x8xf32> to vector<1x7x8xf32>
    %54 = vector.shape_cast %53 : vector<1x7x8xf32> to vector<7x8xf32>
    %55 = vector.extract_strided_slice %18 {offsets = [0, 0, 0], sizes = [1, 7, 8], strides = [1, 1, 1]} : vector<16x7x8xf32> to vector<1x7x8xf32>
    %56 = vector.shape_cast %55 : vector<1x7x8xf32> to vector<7x8xf32>
    %57 = arith.subf %54, %56 : vector<7x8xf32>
    %58 = arith.addf %47, %57 : vector<7x8xf32>
    %cst_23 = arith.constant 0.00999999977 : f32
    %59 = vector.broadcast %cst_23 : f32 to vector<7x8xf32>
    %60 = arith.mulf %58, %59 : vector<7x8xf32>
    %c1_24 = arith.constant 1 : index
    %c0_25 = arith.constant 0 : index
    %c0_26 = arith.constant 0 : index
    %61 = vector.load %arg3[%c1_24, %c0_25, %c0_26] : memref<7x7x8xf32, #tpu.memory_space<vmem>>, vector<1x7x8xf32>
    %62 = vector.shape_cast %61 : vector<1x7x8xf32> to vector<7x8xf32>
    %63 = vector.shape_cast %60 : vector<7x8xf32> to vector<1x7x8xf32>
    tpu.vector_store %arg3[%c1_24, %c0_25, %c0_26], %63 {strides = array<i32>} : memref<7x7x8xf32, #tpu.memory_space<vmem>>, vector<1x7x8xf32>,
    %64 = vector.extract_strided_slice %18 {offsets = [11, 0, 0], sizes = [1, 7, 8], strides = [1, 1, 1]} : vector<16x7x8xf32> to vector<1x7x8xf32>
    %65 = vector.shape_cast %64 : vector<1x7x8xf32> to vector<7x8xf32>
    %66 = vector.extract_strided_slice %18 {offsets = [1, 0, 0], sizes = [1, 7, 8], strides = [1, 1, 1]} : vector<16x7x8xf32> to vector<1x7x8xf32>
    %67 = vector.shape_cast %66 : vector<1x7x8xf32> to vector<7x8xf32>
    %68 = arith.subf %65, %67 : vector<7x8xf32>
    %69 = arith.addf %58, %68 : vector<7x8xf32>
    %cst_27 = arith.constant 0.00999999977 : f32
    %70 = vector.broadcast %cst_27 : f32 to vector<7x8xf32>
    %71 = arith.mulf %69, %70 : vector<7x8xf32>
    %c2_28 = arith.constant 2 : index
    %c0_29 = arith.constant 0 : index
    %c0_30 = arith.constant 0 : index
    %72 = vector.load %arg3[%c2_28, %c0_29, %c0_30] : memref<7x7x8xf32, #tpu.memory_space<vmem>>, vector<1x7x8xf32>
    %73 = vector.shape_cast %72 : vector<1x7x8xf32> to vector<7x8xf32>
    %74 = vector.shape_cast %71 : vector<7x8xf32> to vector<1x7x8xf32>
    tpu.vector_store %arg3[%c2_28, %c0_29, %c0_30], %74 {strides = array<i32>} : memref<7x7x8xf32, #tpu.memory_space<vmem>>, vector<1x7x8xf32>,
    %75 = vector.extract_strided_slice %18 {offsets = [12, 0, 0], sizes = [1, 7, 8], strides = [1, 1, 1]} : vector<16x7x8xf32> to vector<1x7x8xf32>
    %76 = vector.shape_cast %75 : vector<1x7x8xf32> to vector<7x8xf32>
    %77 = vector.extract_strided_slice %18 {offsets = [2, 0, 0], sizes = [1, 7, 8], strides = [1, 1, 1]} : vector<16x7x8xf32> to vector<1x7x8xf32>
    %78 = vector.shape_cast %77 : vector<1x7x8xf32> to vector<7x8xf32>
    %79 = arith.subf %76, %78 : vector<7x8xf32>
    %80 = arith.addf %69, %79 : vector<7x8xf32>
    %cst_31 = arith.constant 0.00999999977 : f32
    %81 = vector.broadcast %cst_31 : f32 to vector<7x8xf32>
    %82 = arith.mulf %80, %81 : vector<7x8xf32>
    %c3_32 = arith.constant 3 : index
    %c0_33 = arith.constant 0 : index
    %c0_34 = arith.constant 0 : index
    %83 = vector.load %arg3[%c3_32, %c0_33, %c0_34] : memref<7x7x8xf32, #tpu.memory_space<vmem>>, vector<1x7x8xf32>
    %84 = vector.shape_cast %83 : vector<1x7x8xf32> to vector<7x8xf32>
    %85 = vector.shape_cast %82 : vector<7x8xf32> to vector<1x7x8xf32>
    tpu.vector_store %arg3[%c3_32, %c0_33, %c0_34], %85 {strides = array<i32>} : memref<7x7x8xf32, #tpu.memory_space<vmem>>, vector<1x7x8xf32>,
    %86 = vector.extract_strided_slice %18 {offsets = [13, 0, 0], sizes = [1, 7, 8], strides = [1, 1, 1]} : vector<16x7x8xf32> to vector<1x7x8xf32>
    %87 = vector.shape_cast %86 : vector<1x7x8xf32> to vector<7x8xf32>
    %88 = vector.extract_strided_slice %18 {offsets = [3, 0, 0], sizes = [1, 7, 8], strides = [1, 1, 1]} : vector<16x7x8xf32> to vector<1x7x8xf32>
    %89 = vector.shape_cast %88 : vector<1x7x8xf32> to vector<7x8xf32>
    %90 = arith.subf %87, %89 : vector<7x8xf32>
    %91 = arith.addf %80, %90 : vector<7x8xf32>
    %cst_35 = arith.constant 0.00999999977 : f32
    %92 = vector.broadcast %cst_35 : f32 to vector<7x8xf32>
    %93 = arith.mulf %91, %92 : vector<7x8xf32>
    %c4_36 = arith.constant 4 : index
    %c0_37 = arith.constant 0 : index
    %c0_38 = arith.constant 0 : index
    %94 = vector.load %arg3[%c4_36, %c0_37, %c0_38] : memref<7x7x8xf32, #tpu.memory_space<vmem>>, vector<1x7x8xf32>
    %95 = vector.shape_cast %94 : vector<1x7x8xf32> to vector<7x8xf32>
    %96 = vector.shape_cast %93 : vector<7x8xf32> to vector<1x7x8xf32>
    tpu.vector_store %arg3[%c4_36, %c0_37, %c0_38], %96 {strides = array<i32>} : memref<7x7x8xf32, #tpu.memory_space<vmem>>, vector<1x7x8xf32>,
    %97 = vector.extract_strided_slice %18 {offsets = [14, 0, 0], sizes = [1, 7, 8], strides = [1, 1, 1]} : vector<16x7x8xf32> to vector<1x7x8xf32>
    %98 = vector.shape_cast %97 : vector<1x7x8xf32> to vector<7x8xf32>
    %99 = vector.extract_strided_slice %18 {offsets = [4, 0, 0], sizes = [1, 7, 8], strides = [1, 1, 1]} : vector<16x7x8xf32> to vector<1x7x8xf32>
    %100 = vector.shape_cast %99 : vector<1x7x8xf32> to vector<7x8xf32>
    %101 = arith.subf %98, %100 : vector<7x8xf32>
    %102 = arith.addf %91, %101 : vector<7x8xf32>
    %cst_39 = arith.constant 0.00999999977 : f32
    %103 = vector.broadcast %cst_39 : f32 to vector<7x8xf32>
    %104 = arith.mulf %102, %103 : vector<7x8xf32>
    %c5_40 = arith.constant 5 : index
    %c0_41 = arith.constant 0 : index
    %c0_42 = arith.constant 0 : index
    %105 = vector.load %arg3[%c5_40, %c0_41, %c0_42] : memref<7x7x8xf32, #tpu.memory_space<vmem>>, vector<1x7x8xf32>
    %106 = vector.shape_cast %105 : vector<1x7x8xf32> to vector<7x8xf32>
    %107 = vector.shape_cast %104 : vector<7x8xf32> to vector<1x7x8xf32>
    tpu.vector_store %arg3[%c5_40, %c0_41, %c0_42], %107 {strides = array<i32>} : memref<7x7x8xf32, #tpu.memory_space<vmem>>, vector<1x7x8xf32>,
    %108 = vector.extract_strided_slice %18 {offsets = [15, 0, 0], sizes = [1, 7, 8], strides = [1, 1, 1]} : vector<16x7x8xf32> to vector<1x7x8xf32>
    %109 = vector.shape_cast %108 : vector<1x7x8xf32> to vector<7x8xf32>
    %110 = vector.extract_strided_slice %18 {offsets = [5, 0, 0], sizes = [1, 7, 8], strides = [1, 1, 1]} : vector<16x7x8xf32> to vector<1x7x8xf32>
    %111 = vector.shape_cast %110 : vector<1x7x8xf32> to vector<7x8xf32>
    %112 = arith.subf %109, %111 : vector<7x8xf32>
    %113 = arith.addf %102, %112 : vector<7x8xf32>
    %cst_43 = arith.constant 0.00999999977 : f32
    %114 = vector.broadcast %cst_43 : f32 to vector<7x8xf32>
    %115 = arith.mulf %113, %114 : vector<7x8xf32>
    %c6_44 = arith.constant 6 : index
    %c0_45 = arith.constant 0 : index
    %c0_46 = arith.constant 0 : index
    %116 = vector.load %arg3[%c6_44, %c0_45, %c0_46] : memref<7x7x8xf32, #tpu.memory_space<vmem>>, vector<1x7x8xf32>
    %117 = vector.shape_cast %116 : vector<1x7x8xf32> to vector<7x8xf32>
    %118 = vector.shape_cast %115 : vector<7x8xf32> to vector<1x7x8xf32>
    tpu.vector_store %arg3[%c6_44, %c0_45, %c0_46], %118 {strides = array<i32>} : memref<7x7x8xf32, #tpu.memory_space<vmem>>, vector<1x7x8xf32>,
    %c0_47 = arith.constant 0 : index
    %c0_48 = arith.constant 0 : index
    %c0_49 = arith.constant 0 : index
    %119 = vector.load %arg2[%c0_47, %c0_48, %c0_49] : memref<16x16x8xf32, #tpu.memory_space<vmem>>, vector<16x7x8xf32>
    %c0_50 = arith.constant 0 : index
    %c1_51 = arith.constant 1 : index
    %c0_52 = arith.constant 0 : index
    %120 = vector.load %arg2[%c0_50, %c1_51, %c0_52] : memref<16x16x8xf32, #tpu.memory_space<vmem>>, vector<16x7x8xf32>
    %121 = arith.addf %119, %120 : vector<16x7x8xf32>
    %c0_53 = arith.constant 0 : index
    %c2_54 = arith.constant 2 : index
    %c0_55 = arith.constant 0 : index
    %122 = vector.load %arg2[%c0_53, %c2_54, %c0_55] : memref<16x16x8xf32, #tpu.memory_space<vmem>>, vector<16x7x8xf32>
    %123 = arith.addf %121, %122 : vector<16x7x8xf32>
    %c0_56 = arith.constant 0 : index
    %c3_57 = arith.constant 3 : index
    %c0_58 = arith.constant 0 : index
    %124 = vector.load %arg2[%c0_56, %c3_57, %c0_58] : memref<16x16x8xf32, #tpu.memory_space<vmem>>, vector<16x7x8xf32>
    %125 = arith.addf %123, %124 : vector<16x7x8xf32>
    %c0_59 = arith.constant 0 : index
    %c4_60 = arith.constant 4 : index
    %c0_61 = arith.constant 0 : index
    %126 = vector.load %arg2[%c0_59, %c4_60, %c0_61] : memref<16x16x8xf32, #tpu.memory_space<vmem>>, vector<16x7x8xf32>
    %127 = arith.addf %125, %126 : vector<16x7x8xf32>
    %c0_62 = arith.constant 0 : index
    %c5_63 = arith.constant 5 : index
    %c0_64 = arith.constant 0 : index
    %128 = vector.load %arg2[%c0_62, %c5_63, %c0_64] : memref<16x16x8xf32, #tpu.memory_space<vmem>>, vector<16x7x8xf32>
    %129 = arith.addf %127, %128 : vector<16x7x8xf32>
    %c0_65 = arith.constant 0 : index
    %c6_66 = arith.constant 6 : index
    %c0_67 = arith.constant 0 : index
    %130 = vector.load %arg2[%c0_65, %c6_66, %c0_67] : memref<16x16x8xf32, #tpu.memory_space<vmem>>, vector<16x7x8xf32>
    %131 = arith.addf %129, %130 : vector<16x7x8xf32>
    %c0_68 = arith.constant 0 : index
    %c7_69 = arith.constant 7 : index
    %c0_70 = arith.constant 0 : index
    %132 = vector.load %arg2[%c0_68, %c7_69, %c0_70] : memref<16x16x8xf32, #tpu.memory_space<vmem>>, vector<16x7x8xf32>
    %133 = arith.addf %131, %132 : vector<16x7x8xf32>
    %c0_71 = arith.constant 0 : index
    %c8_72 = arith.constant 8 : index
    %c0_73 = arith.constant 0 : index
    %134 = vector.load %arg2[%c0_71, %c8_72, %c0_73] : memref<16x16x8xf32, #tpu.memory_space<vmem>>, vector<16x7x8xf32>
    %135 = arith.addf %133, %134 : vector<16x7x8xf32>
    %c0_74 = arith.constant 0 : index
    %c9_75 = arith.constant 9 : index
    %c0_76 = arith.constant 0 : index
    %136 = vector.load %arg2[%c0_74, %c9_75, %c0_76] : memref<16x16x8xf32, #tpu.memory_space<vmem>>, vector<16x7x8xf32>
    %137 = arith.addf %135, %136 : vector<16x7x8xf32>
    %138 = vector.extract_strided_slice %137 {offsets = [0, 0, 0], sizes = [1, 7, 8], strides = [1, 1, 1]} : vector<16x7x8xf32> to vector<1x7x8xf32>
    %139 = vector.shape_cast %138 : vector<1x7x8xf32> to vector<7x8xf32>
    %140 = vector.extract_strided_slice %137 {offsets = [1, 0, 0], sizes = [1, 7, 8], strides = [1, 1, 1]} : vector<16x7x8xf32> to vector<1x7x8xf32>
    %141 = vector.shape_cast %140 : vector<1x7x8xf32> to vector<7x8xf32>
    %142 = arith.addf %139, %141 : vector<7x8xf32>
    %143 = vector.extract_strided_slice %137 {offsets = [2, 0, 0], sizes = [1, 7, 8], strides = [1, 1, 1]} : vector<16x7x8xf32> to vector<1x7x8xf32>
    %144 = vector.shape_cast %143 : vector<1x7x8xf32> to vector<7x8xf32>
    %145 = arith.addf %142, %144 : vector<7x8xf32>
    %146 = vector.extract_strided_slice %137 {offsets = [3, 0, 0], sizes = [1, 7, 8], strides = [1, 1, 1]} : vector<16x7x8xf32> to vector<1x7x8xf32>
    %147 = vector.shape_cast %146 : vector<1x7x8xf32> to vector<7x8xf32>
    %148 = arith.addf %145, %147 : vector<7x8xf32>
    %149 = vector.extract_strided_slice %137 {offsets = [4, 0, 0], sizes = [1, 7, 8], strides = [1, 1, 1]} : vector<16x7x8xf32> to vector<1x7x8xf32>
    %150 = vector.shape_cast %149 : vector<1x7x8xf32> to vector<7x8xf32>
    %151 = arith.addf %148, %150 : vector<7x8xf32>
    %152 = vector.extract_strided_slice %137 {offsets = [5, 0, 0], sizes = [1, 7, 8], strides = [1, 1, 1]} : vector<16x7x8xf32> to vector<1x7x8xf32>
    %153 = vector.shape_cast %152 : vector<1x7x8xf32> to vector<7x8xf32>
    %154 = arith.addf %151, %153 : vector<7x8xf32>
    %155 = vector.extract_strided_slice %137 {offsets = [6, 0, 0], sizes = [1, 7, 8], strides = [1, 1, 1]} : vector<16x7x8xf32> to vector<1x7x8xf32>
    %156 = vector.shape_cast %155 : vector<1x7x8xf32> to vector<7x8xf32>
    %157 = arith.addf %154, %156 : vector<7x8xf32>
    %158 = vector.extract_strided_slice %137 {offsets = [7, 0, 0], sizes = [1, 7, 8], strides = [1, 1, 1]} : vector<16x7x8xf32> to vector<1x7x8xf32>
    %159 = vector.shape_cast %158 : vector<1x7x8xf32> to vector<7x8xf32>
    %160 = arith.addf %157, %159 : vector<7x8xf32>
    %161 = vector.extract_strided_slice %137 {offsets = [8, 0, 0], sizes = [1, 7, 8], strides = [1, 1, 1]} : vector<16x7x8xf32> to vector<1x7x8xf32>
    %162 = vector.shape_cast %161 : vector<1x7x8xf32> to vector<7x8xf32>
    %163 = arith.addf %160, %162 : vector<7x8xf32>
    %164 = vector.extract_strided_slice %137 {offsets = [9, 0, 0], sizes = [1, 7, 8], strides = [1, 1, 1]} : vector<16x7x8xf32> to vector<1x7x8xf32>
    %165 = vector.shape_cast %164 : vector<1x7x8xf32> to vector<7x8xf32>
    %166 = arith.addf %163, %165 : vector<7x8xf32>
    %cst_77 = arith.constant 0.00999999977 : f32
    %167 = vector.broadcast %cst_77 : f32 to vector<7x8xf32>
    %168 = arith.mulf %166, %167 : vector<7x8xf32>
    %c0_78 = arith.constant 0 : index
    %c0_79 = arith.constant 0 : index
    %c0_80 = arith.constant 0 : index
    %169 = vector.load %arg4[%c0_78, %c0_79, %c0_80] : memref<7x7x8xf32, #tpu.memory_space<vmem>>, vector<1x7x8xf32>
    %170 = vector.shape_cast %169 : vector<1x7x8xf32> to vector<7x8xf32>
    %171 = vector.shape_cast %168 : vector<7x8xf32> to vector<1x7x8xf32>
    tpu.vector_store %arg4[%c0_78, %c0_79, %c0_80], %171 {strides = array<i32>} : memref<7x7x8xf32, #tpu.memory_space<vmem>>, vector<1x7x8xf32>,
    %172 = vector.extract_strided_slice %137 {offsets = [10, 0, 0], sizes = [1, 7, 8], strides = [1, 1, 1]} : vector<16x7x8xf32> to vector<1x7x8xf32>
    %173 = vector.shape_cast %172 : vector<1x7x8xf32> to vector<7x8xf32>
    %174 = vector.extract_strided_slice %137 {offsets = [0, 0, 0], sizes = [1, 7, 8], strides = [1, 1, 1]} : vector<16x7x8xf32> to vector<1x7x8xf32>
    %175 = vector.shape_cast %174 : vector<1x7x8xf32> to vector<7x8xf32>
    %176 = arith.subf %173, %175 : vector<7x8xf32>
    %177 = arith.addf %166, %176 : vector<7x8xf32>
    %cst_81 = arith.constant 0.00999999977 : f32
    %178 = vector.broadcast %cst_81 : f32 to vector<7x8xf32>
    %179 = arith.mulf %177, %178 : vector<7x8xf32>
    %c1_82 = arith.constant 1 : index
    %c0_83 = arith.constant 0 : index
    %c0_84 = arith.constant 0 : index
    %180 = vector.load %arg4[%c1_82, %c0_83, %c0_84] : memref<7x7x8xf32, #tpu.memory_space<vmem>>, vector<1x7x8xf32>
    %181 = vector.shape_cast %180 : vector<1x7x8xf32> to vector<7x8xf32>
    %182 = vector.shape_cast %179 : vector<7x8xf32> to vector<1x7x8xf32>
    tpu.vector_store %arg4[%c1_82, %c0_83, %c0_84], %182 {strides = array<i32>} : memref<7x7x8xf32, #tpu.memory_space<vmem>>, vector<1x7x8xf32>,
    %183 = vector.extract_strided_slice %137 {offsets = [11, 0, 0], sizes = [1, 7, 8], strides = [1, 1, 1]} : vector<16x7x8xf32> to vector<1x7x8xf32>
    %184 = vector.shape_cast %183 : vector<1x7x8xf32> to vector<7x8xf32>
    %185 = vector.extract_strided_slice %137 {offsets = [1, 0, 0], sizes = [1, 7, 8], strides = [1, 1, 1]} : vector<16x7x8xf32> to vector<1x7x8xf32>
    %186 = vector.shape_cast %185 : vector<1x7x8xf32> to vector<7x8xf32>
    %187 = arith.subf %184, %186 : vector<7x8xf32>
    %188 = arith.addf %177, %187 : vector<7x8xf32>
    %cst_85 = arith.constant 0.00999999977 : f32
    %189 = vector.broadcast %cst_85 : f32 to vector<7x8xf32>
    %190 = arith.mulf %188, %189 : vector<7x8xf32>
    %c2_86 = arith.constant 2 : index
    %c0_87 = arith.constant 0 : index
    %c0_88 = arith.constant 0 : index
    %191 = vector.load %arg4[%c2_86, %c0_87, %c0_88] : memref<7x7x8xf32, #tpu.memory_space<vmem>>, vector<1x7x8xf32>
    %192 = vector.shape_cast %191 : vector<1x7x8xf32> to vector<7x8xf32>
    %193 = vector.shape_cast %190 : vector<7x8xf32> to vector<1x7x8xf32>
    tpu.vector_store %arg4[%c2_86, %c0_87, %c0_88], %193 {strides = array<i32>} : memref<7x7x8xf32, #tpu.memory_space<vmem>>, vector<1x7x8xf32>,
    %194 = vector.extract_strided_slice %137 {offsets = [12, 0, 0], sizes = [1, 7, 8], strides = [1, 1, 1]} : vector<16x7x8xf32> to vector<1x7x8xf32>
    %195 = vector.shape_cast %194 : vector<1x7x8xf32> to vector<7x8xf32>
    %196 = vector.extract_strided_slice %137 {offsets = [2, 0, 0], sizes = [1, 7, 8], strides = [1, 1, 1]} : vector<16x7x8xf32> to vector<1x7x8xf32>
    %197 = vector.shape_cast %196 : vector<1x7x8xf32> to vector<7x8xf32>
    %198 = arith.subf %195, %197 : vector<7x8xf32>
    %199 = arith.addf %188, %198 : vector<7x8xf32>
    %cst_89 = arith.constant 0.00999999977 : f32
    %200 = vector.broadcast %cst_89 : f32 to vector<7x8xf32>
    %201 = arith.mulf %199, %200 : vector<7x8xf32>
    %c3_90 = arith.constant 3 : index
    %c0_91 = arith.constant 0 : index
    %c0_92 = arith.constant 0 : index
    %202 = vector.load %arg4[%c3_90, %c0_91, %c0_92] : memref<7x7x8xf32, #tpu.memory_space<vmem>>, vector<1x7x8xf32>
    %203 = vector.shape_cast %202 : vector<1x7x8xf32> to vector<7x8xf32>
    %204 = vector.shape_cast %201 : vector<7x8xf32> to vector<1x7x8xf32>
    tpu.vector_store %arg4[%c3_90, %c0_91, %c0_92], %204 {strides = array<i32>} : memref<7x7x8xf32, #tpu.memory_space<vmem>>, vector<1x7x8xf32>,
    %205 = vector.extract_strided_slice %137 {offsets = [13, 0, 0], sizes = [1, 7, 8], strides = [1, 1, 1]} : vector<16x7x8xf32> to vector<1x7x8xf32>
    %206 = vector.shape_cast %205 : vector<1x7x8xf32> to vector<7x8xf32>
    %207 = vector.extract_strided_slice %137 {offsets = [3, 0, 0], sizes = [1, 7, 8], strides = [1, 1, 1]} : vector<16x7x8xf32> to vector<1x7x8xf32>
    %208 = vector.shape_cast %207 : vector<1x7x8xf32> to vector<7x8xf32>
    %209 = arith.subf %206, %208 : vector<7x8xf32>
    %210 = arith.addf %199, %209 : vector<7x8xf32>
    %cst_93 = arith.constant 0.00999999977 : f32
    %211 = vector.broadcast %cst_93 : f32 to vector<7x8xf32>
    %212 = arith.mulf %210, %211 : vector<7x8xf32>
    %c4_94 = arith.constant 4 : index
    %c0_95 = arith.constant 0 : index
    %c0_96 = arith.constant 0 : index
    %213 = vector.load %arg4[%c4_94, %c0_95, %c0_96] : memref<7x7x8xf32, #tpu.memory_space<vmem>>, vector<1x7x8xf32>
    %214 = vector.shape_cast %213 : vector<1x7x8xf32> to vector<7x8xf32>
    %215 = vector.shape_cast %212 : vector<7x8xf32> to vector<1x7x8xf32>
    tpu.vector_store %arg4[%c4_94, %c0_95, %c0_96], %215 {strides = array<i32>} : memref<7x7x8xf32, #tpu.memory_space<vmem>>, vector<1x7x8xf32>,
    %216 = vector.extract_strided_slice %137 {offsets = [14, 0, 0], sizes = [1, 7, 8], strides = [1, 1, 1]} : vector<16x7x8xf32> to vector<1x7x8xf32>
    %217 = vector.shape_cast %216 : vector<1x7x8xf32> to vector<7x8xf32>
    %218 = vector.extract_strided_slice %137 {offsets = [4, 0, 0], sizes = [1, 7, 8], strides = [1, 1, 1]} : vector<16x7x8xf32> to vector<1x7x8xf32>
    %219 = vector.shape_cast %218 : vector<1x7x8xf32> to vector<7x8xf32>
    %220 = arith.subf %217, %219 : vector<7x8xf32>
    %221 = arith.addf %210, %220 : vector<7x8xf32>
    %cst_97 = arith.constant 0.00999999977 : f32
    %222 = vector.broadcast %cst_97 : f32 to vector<7x8xf32>
    %223 = arith.mulf %221, %222 : vector<7x8xf32>
    %c5_98 = arith.constant 5 : index
    %c0_99 = arith.constant 0 : index
    %c0_100 = arith.constant 0 : index
    %224 = vector.load %arg4[%c5_98, %c0_99, %c0_100] : memref<7x7x8xf32, #tpu.memory_space<vmem>>, vector<1x7x8xf32>
    %225 = vector.shape_cast %224 : vector<1x7x8xf32> to vector<7x8xf32>
    %226 = vector.shape_cast %223 : vector<7x8xf32> to vector<1x7x8xf32>
    tpu.vector_store %arg4[%c5_98, %c0_99, %c0_100], %226 {strides = array<i32>} : memref<7x7x8xf32, #tpu.memory_space<vmem>>, vector<1x7x8xf32>,
    %227 = vector.extract_strided_slice %137 {offsets = [15, 0, 0], sizes = [1, 7, 8], strides = [1, 1, 1]} : vector<16x7x8xf32> to vector<1x7x8xf32>
    %228 = vector.shape_cast %227 : vector<1x7x8xf32> to vector<7x8xf32>
    %229 = vector.extract_strided_slice %137 {offsets = [5, 0, 0], sizes = [1, 7, 8], strides = [1, 1, 1]} : vector<16x7x8xf32> to vector<1x7x8xf32>
    %230 = vector.shape_cast %229 : vector<1x7x8xf32> to vector<7x8xf32>
    %231 = arith.subf %228, %230 : vector<7x8xf32>
    %232 = arith.addf %221, %231 : vector<7x8xf32>
    %cst_101 = arith.constant 0.00999999977 : f32
    %233 = vector.broadcast %cst_101 : f32 to vector<7x8xf32>
    %234 = arith.mulf %232, %233 : vector<7x8xf32>
    %c6_102 = arith.constant 6 : index
    %c0_103 = arith.constant 0 : index
    %c0_104 = arith.constant 0 : index
    %235 = vector.load %arg4[%c6_102, %c0_103, %c0_104] : memref<7x7x8xf32, #tpu.memory_space<vmem>>, vector<1x7x8xf32>
    %236 = vector.shape_cast %235 : vector<1x7x8xf32> to vector<7x8xf32>
    %237 = vector.shape_cast %234 : vector<7x8xf32> to vector<1x7x8xf32>
    tpu.vector_store %arg4[%c6_102, %c0_103, %c0_104], %237 {strides = array<i32>} : memref<7x7x8xf32, #tpu.memory_space<vmem>>, vector<1x7x8xf32>,
    return
  }
  func.func @transform_0(%arg0: i32) -> (i32, i32, i32) {
    %c0_i32 = arith.constant 0 : i32
    %c0_i32_0 = arith.constant 0 : i32
    %c0_i32_1 = arith.constant 0 : i32
    return %c0_i32, %c0_i32_0, %arg0 : i32, i32, i32
  }
  func.func @transform_1(%arg0: i32) -> (i32, i32, i32) {
    %c0_i32 = arith.constant 0 : i32
    %c0_i32_0 = arith.constant 0 : i32
    %c0_i32_1 = arith.constant 0 : i32
    return %c0_i32, %c0_i32_0, %arg0 : i32, i32, i32
  }
  func.func @transform_2(%arg0: i32) -> (i32, i32, i32) {
    %c0_i32 = arith.constant 0 : i32
    %c0_i32_0 = arith.constant 0 : i32
    %c0_i32_1 = arith.constant 0 : i32
    return %c0_i32, %c0_i32_0, %arg0 : i32, i32, i32
  }
  func.func @transform_3(%arg0: i32) -> (i32, i32, i32) {
    %c0_i32 = arith.constant 0 : i32
    %c0_i32_0 = arith.constant 0 : i32
    %c0_i32_1 = arith.constant 0 : i32
    return %c0_i32, %c0_i32_0, %arg0 : i32, i32, i32
  }
}

</mosaic_0001>

<bundles_post_ra>
// kernel: tpu_custom_call.1
= control target key start
LH: loop header
LB: loop body
LE: loop exit
PB: predicated region body
PF: predicated region fallthrough
CT: control target
= control target key end

     0   :  { %9 = vsyncpa [#allocation3], 0  ;;  %vm329_vm0 = vcmask 63488   ;;  %s790_s28 = smov [#allocation2]   ;;  %s1866_s0 = inlined_call_operand.vmem [shape: f32[16,16,8], index: 0, kind: input, shape index: {}]   ;;  %s1867_s1 = inlined_call_operand.vmem [shape: f32[16,16,8], index: 1, kind: input, shape index: {}]   ;;  %s1868_s2 = inlined_call_operand.hbm [shape: f32[7,7,8], index: 2, kind: output, shape index: {0}]   ;;  %s1869_s3 = inlined_call_operand.hbm [shape: f32[7,7,8], index: 3, kind: output, shape index: {1}]  }
   0x1   :  { %v15_v0 = vld [vmem:[%s1866_s0] sm:$0x7f]  ;;  %v16_v1 = vld [vmem:[%s1866_s0 + $0x10] sm:$0x7f]  ;;  %s711_s29 = sshll.u32 %s790_s28, 4  ;;  %s712_s29 = int_to_ptr.vmem [resolvable:$true] %s711_s29 }
   0x2   :  { %v17_v2 = vld [vmem:[%s1866_s0 + $0x20] sm:$0x7f]  ;;  %v18_v3 = vld [vmem:[%s1866_s0 + $0x30] sm:$0x7f] }
   0x3   :  { %v19_v4 = vld [vmem:[%s1866_s0 + $0x40] sm:$0x7f]  ;;  %v20_v5 = vld [vmem:[%s1866_s0 + $0x50] sm:$0x7f] }
   0x4   :  { %v21_v6 = vld [vmem:[%s1866_s0 + $0x60] sm:$0x7f]  ;;  %v22_v7 = vld [vmem:[%s1866_s0 + $0x70] sm:$0x7f] }
   0x5   :  { %v31_v8 = vld [vmem:[%s1866_s0 + $0x1] sm:$0x7f]  ;;  %v32_v9 = vld [vmem:[%s1866_s0 + $0x11] sm:$0x7f] }
   0x6   :  { %v33_v10 = vld [vmem:[%s1866_s0 + $0x21] sm:$0x7f]  ;;  %v34_v11 = vld [vmem:[%s1866_s0 + $0x31] sm:$0x7f]  ;;  %v47_v13 = vadd.f32 %v31_v8, %v15_v0  ;;  %v48_v14 = vadd.f32 %v32_v9, %v16_v1 }
   0x7   :  { %v35_v12 = vld [vmem:[%s1866_s0 + $0x41] sm:$0x7f]  ;;  %v36_v15 = vld [vmem:[%s1866_s0 + $0x51] sm:$0x7f]  ;;  %v49_v18 = vadd.f32 %v33_v10, %v17_v2  ;;  %v50_v19 = vadd.f32 %v34_v11, %v18_v3 }
   0x8   :  { %v37_v16 = vld [vmem:[%s1866_s0 + $0x61] sm:$0x7f]  ;;  %v38_v17 = vld [vmem:[%s1866_s0 + $0x71] sm:$0x7f]  ;;  %v51_v20 = vadd.f32 %v35_v12, %v19_v4  ;;  %v52_v23 = vadd.f32 %v36_v15, %v20_v5 }
   0x9   :  { %v23_v21 = vld [vmem:[%s1866_s0 + $0x80] sm:$0x7f]  ;;  %v53_v24 = vadd.f32 %v37_v16, %v21_v6  ;;  %v24_v26 = vld [vmem:[%s1866_s0 + $0x90] sm:$0x7f]  ;;  %v54_v31 = vadd.f32 %v38_v17, %v22_v7 }
   0xa   :  { %v39_v22 = vld [vmem:[%s1866_s0 + $0x81] sm:$0x7f]  ;;  %v64_v27 = vld [vmem:[%s1866_s0 + $0x12] sm:$0x7f] }
   0xb   :  { %v63_v25 = vld [vmem:[%s1866_s0 + $0x2] sm:$0x7f]  ;;  %v66_v29 = vld [vmem:[%s1866_s0 + $0x32] sm:$0x7f]  ;;  %v80_v35 = vadd.f32 %v64_v27, %v48_v14  ;;  %v55_v39 = vadd.f32 %v39_v22, %v23_v21 }
   0xc   :  { %v65_v28 = vld [vmem:[%s1866_s0 + $0x22] sm:$0x7f]  ;;  %v79_v30 = vadd.f32 %v63_v25, %v47_v13  ;;  %v68_v33 = vld [vmem:[%s1866_s0 + $0x52] sm:$0x7f]  ;;  %v82_v37 = vadd.f32 %v66_v29, %v50_v19 }
   0xd   :  { %v67_v32 = vld [vmem:[%s1866_s0 + $0x42] sm:$0x7f]  ;;  %v81_v36 = vadd.f32 %v65_v28, %v49_v18  ;;  %v40_v38 = vld [vmem:[%s1866_s0 + $0x91] sm:$0x7f]  ;;  %v84_v43 = vadd.f32 %v68_v33, %v52_v23 }
   0xe   :  { %v69_v34 = vld [vmem:[%s1866_s0 + $0x62] sm:$0x7f]  ;;  %v70_v40 = vld [vmem:[%s1866_s0 + $0x72] sm:$0x7f]  ;;  %v83_v42 = vadd.f32 %v67_v32, %v51_v20  ;;  %v56_v54 = vadd.f32 %v40_v38, %v24_v26 }
   0xf   :  { %v71_v41 = vld [vmem:[%s1866_s0 + $0x82] sm:$0x7f]  ;;  %v85_v44 = vadd.f32 %v69_v34, %v53_v24  ;;  %v96_v46 = vld [vmem:[%s1866_s0 + $0x13] sm:$0x7f]  ;;  %v86_v56 = vadd.f32 %v70_v40, %v54_v31 }
  0x10   :  { %v95_v45 = vld [vmem:[%s1866_s0 + $0x3] sm:$0x7f]  ;;  %v98_v48 = vld [vmem:[%s1866_s0 + $0x33] sm:$0x7f]  ;;  %v112_v52 = vadd.f32 %v96_v46, %v80_v35  ;;  %v87_v61 = vadd.f32 %v71_v41, %v55_v39 }
  0x11   :  { %v97_v47 = vld [vmem:[%s1866_s0 + $0x23] sm:$0x7f]  ;;  %v100_v50 = vld [vmem:[%s1866_s0 + $0x53] sm:$0x7f]  ;;  %v111_v51 = vadd.f32 %v95_v45, %v79_v30  ;;  %v114_v59 = vadd.f32 %v98_v48, %v82_v37 }
  0x12   :  { %v99_v49 = vld [vmem:[%s1866_s0 + $0x43] sm:$0x7f]  ;;  %v113_v53 = vadd.f32 %v97_v47, %v81_v36  ;;  %v72_v55 = vld [vmem:[%s1866_s0 + $0x92] sm:$0x7f]  ;;  %v116_v63 = vadd.f32 %v100_v50, %v84_v43 }
  0x13   :  { %v101_v57 = vld [vmem:[%s1866_s0 + $0x63] sm:$0x7f]  ;;  %v102_v58 = vld [vmem:[%s1866_s0 + $0x73] sm:$0x7f]  ;;  %v115_v60 = vadd.f32 %v99_v49, %v83_v42  ;;  %v88_v13 = vadd.f32 %v72_v55, %v56_v54 }
  0x14   :  { %v103_v62 = vld [vmem:[%s1866_s0 + $0x83] sm:$0x7f]  ;;  %v128_v1 = vld [vmem:[%s1866_s0 + $0x14] sm:$0x7f]  ;;  %v117_v2 = vadd.f32 %v101_v57, %v85_v44  ;;  %v118_v15 = vadd.f32 %v102_v58, %v86_v56 }
  0x15   :  { %v127_v0 = vld [vmem:[%s1866_s0 + $0x4] sm:$0x7f]  ;;  %v130_v4 = vld [vmem:[%s1866_s0 + $0x34] sm:$0x7f]  ;;  %v144_v7 = vadd.f32 %v128_v1, %v112_v52  ;;  %v119_v18 = vadd.f32 %v103_v62, %v87_v61 }
  0x16   :  { %v129_v3 = vld [vmem:[%s1866_s0 + $0x24] sm:$0x7f]  ;;  %v143_v6 = vadd.f32 %v127_v0, %v111_v51  ;;  %v132_v8 = vld [vmem:[%s1866_s0 + $0x54] sm:$0x7f]  ;;  %v146_v11 = vadd.f32 %v130_v4, %v114_v59 }
  0x17   :  { %v131_v5 = vld [vmem:[%s1866_s0 + $0x44] sm:$0x7f]  ;;  %v145_v10 = vadd.f32 %v129_v3, %v113_v53  ;;  %v104_v14 = vld [vmem:[%s1866_s0 + $0x93] sm:$0x7f]  ;;  %v148_v19 = vadd.f32 %v132_v8, %v116_v63 }
  0x18   :  { %v133_v9 = vld [vmem:[%s1866_s0 + $0x64] sm:$0x7f]  ;;  %v147_v12 = vadd.f32 %v131_v5, %v115_v60  ;;  %v134_v16 = vld [vmem:[%s1866_s0 + $0x74] sm:$0x7f]  ;;  %v120_v33 = vadd.f32 %v104_v14, %v88_v13 }
  0x19   :  { %v159_v17 = vld [vmem:[%s1866_s0 + $0x5] sm:$0x7f]  ;;  %v160_v20 = vld [vmem:[%s1866_s0 + $0x15] sm:$0x7f]  ;;  %v149_v24 = vadd.f32 %v133_v9, %v117_v2  ;;  %v150_v34 = vadd.f32 %v134_v16, %v118_v15 }
  0x1a   :  { %v161_v21 = vld [vmem:[%s1866_s0 + $0x25] sm:$0x7f]  ;;  %v162_v22 = vld [vmem:[%s1866_s0 + $0x35] sm:$0x7f]  ;;  %v175_v23 = vadd.f32 %v159_v17, %v143_v6  ;;  %v176_v27 = vadd.f32 %v160_v20, %v144_v7 }
  0x1b   :  { %v163_v25 = vld [vmem:[%s1866_s0 + $0x45] sm:$0x7f]  ;;  %v164_v26 = vld [vmem:[%s1866_s0 + $0x55] sm:$0x7f]  ;;  %v177_v28 = vadd.f32 %v161_v21, %v145_v10  ;;  %v178_v29 = vadd.f32 %v162_v22, %v146_v11 }
  0x1c   :  { %v135_v30 = vld [vmem:[%s1866_s0 + $0x84] sm:$0x7f]  ;;  %v179_v32 = vadd.f32 %v163_v25, %v147_v12  ;;  %v192_v36 = vld [vmem:[%s1866_s0 + $0x16] sm:$0x7f]  ;;  %v180_v39 = vadd.f32 %v164_v26, %v148_v19 }
  0x1d   :  { %v165_v31 = vld [vmem:[%s1866_s0 + $0x65] sm:$0x7f]  ;;  %v136_v38 = vld [vmem:[%s1866_s0 + $0x94] sm:$0x7f]  ;;  %v208_v43 = vadd.f32 %v192_v36, %v176_v27  ;;  %v151_v45 = vadd.f32 %v135_v30, %v119_v18 }
  0x1e   :  { %v191_v35 = vld [vmem:[%s1866_s0 + $0x6] sm:$0x7f]  ;;  %v194_v40 = vld [vmem:[%s1866_s0 + $0x36] sm:$0x7f]  ;;  %v181_v48 = vadd.f32 %v165_v31, %v149_v24  ;;  %v152_v55 = vadd.f32 %v136_v38, %v120_v33 }
  0x1f   :  { %v193_v37 = vld [vmem:[%s1866_s0 + $0x26] sm:$0x7f]  ;;  %v207_v42 = vadd.f32 %v191_v35, %v175_v23  ;;  %v166_v46 = vld [vmem:[%s1866_s0 + $0x75] sm:$0x7f]  ;;  %v210_v50 = vadd.f32 %v194_v40, %v178_v29 }
  0x20   :  { %v195_v41 = vld [vmem:[%s1866_s0 + $0x46] sm:$0x7f]  ;;  %v209_v44 = vadd.f32 %v193_v37, %v177_v28  ;;  %v196_v49 = vld [vmem:[%s1866_s0 + $0x56] sm:$0x7f]  ;;  %v182_v62 = vadd.f32 %v166_v46, %v150_v34 }
  0x21   :  { %v167_v47 = vld [vmem:[%s1866_s0 + $0x85] sm:$0x7f]  ;;  %v211_v52 = vadd.f32 %v195_v41, %v179_v32  ;;  %v224_v54 = vld [vmem:[%s1866_s0 + $0x17] sm:$0x7f]  ;;  %v212_v1 = vadd.f32 %v196_v49, %v180_v39 }
  0x22   :  { %v197_v51 = vld [vmem:[%s1866_s0 + $0x66] sm:$0x7f]  ;;  %v226_v57 = vld [vmem:[%s1866_s0 + $0x37] sm:$0x7f]  ;;  %v240_v60 = vadd.f32 %v224_v54, %v208_v43  ;;  %v183_v4 = vadd.f32 %v167_v47, %v151_v45 }
  0x23   :  { %v223_v53 = vld [vmem:[%s1866_s0 + $0x7] sm:$0x7f]  ;;  %v168_v61 = vld [vmem:[%s1866_s0 + $0x95] sm:$0x7f]  ;;  %v242_v3 = vadd.f32 %v226_v57, %v210_v50  ;;  %v213_v5 = vadd.f32 %v197_v51, %v181_v48  ;;  %v25_v43 = vld [vmem:[%s1866_s0 + $0xa0] sm:$0x7f] }
  0x24   :  { %v225_v56 = vld [vmem:[%s1866_s0 + $0x27] sm:$0x7f]  ;;  %v239_v59 = vadd.f32 %v223_v53, %v207_v42  ;;  %v198_v63 = vld [vmem:[%s1866_s0 + $0x76] sm:$0x7f]  ;;  %v184_v14 = vadd.f32 %v168_v61, %v152_v55 }
  0x25   :  { %v227_v58 = vld [vmem:[%s1866_s0 + $0x47] sm:$0x7f]  ;;  %v241_v2 = vadd.f32 %v225_v56, %v209_v44  ;;  %v228_v6 = vld [vmem:[%s1866_s0 + $0x57] sm:$0x7f]  ;;  %v214_v19 = vadd.f32 %v198_v63, %v182_v62  ;;  %v26_v62 = vld [vmem:[%s1866_s0 + $0xb0] sm:$0x7f] }
  0x26   :  { %v199_v0 = vld [vmem:[%s1866_s0 + $0x86] sm:$0x7f]  ;;  %v243_v9 = vadd.f32 %v227_v58, %v211_v52  ;;  %v256_v10 = vld [vmem:[%s1866_s0 + $0x18] sm:$0x7f]  ;;  %v244_v21 = vadd.f32 %v228_v6, %v212_v1  ;;  %v42_v63 = vld [vmem:[%s1866_s0 + $0xb1] sm:$0x7f] }
  0x27   :  { %v229_v7 = vld [vmem:[%s1866_s0 + $0x67] sm:$0x7f]  ;;  %v258_v12 = vld [vmem:[%s1866_s0 + $0x38] sm:$0x7f]  ;;  %v272_v16 = vadd.f32 %v256_v10, %v240_v60  ;;  %v215_v24 = vadd.f32 %v199_v0, %v183_v4  ;;  %v58_v4 = vadd.f32 %v42_v63, %v26_v62 }
  0x28   :  { %v255_v8 = vld [vmem:[%s1866_s0 + $0x8] sm:$0x7f]  ;;  %v200_v18 = vld [vmem:[%s1866_s0 + $0x96] sm:$0x7f]  ;;  %v274_v23 = vadd.f32 %v258_v12, %v242_v3  ;;  %v245_v25 = vadd.f32 %v229_v7, %v213_v5  ;;  %v41_v44 = vld [vmem:[%s1866_s0 + $0xa1] sm:$0x7f] }
  0x29   :  { %v257_v11 = vld [vmem:[%s1866_s0 + $0x28] sm:$0x7f]  ;;  %v271_v13 = vadd.f32 %v255_v8, %v239_v59  ;;  %v230_v20 = vld [vmem:[%s1866_s0 + $0x77] sm:$0x7f]  ;;  %v216_v34 = vadd.f32 %v200_v18, %v184_v14  ;;  %v57_v47 = vadd.f32 %v41_v44, %v25_v43  ;;  %v43_v14 = vld [vmem:[%s1866_s0 + $0xc1] sm:$0x7f] }
  0x2a   :  { %v259_v15 = vld [vmem:[%s1866_s0 + $0x48] sm:$0x7f]  ;;  %v273_v17 = vadd.f32 %v257_v11, %v241_v2  ;;  %v260_v22 = vld [vmem:[%s1866_s0 + $0x58] sm:$0x7f]  ;;  %v246_v39 = vadd.f32 %v230_v20, %v214_v19 }
  0x2b   :  { %v287_v26 = vld [vmem:[%s1866_s0 + $0x9] sm:$0x7f]  ;;  %v288_v27 = vld [vmem:[%s1866_s0 + $0x19] sm:$0x7f]  ;;  %v275_v29 = vadd.f32 %v259_v15, %v243_v9  ;;  %v276_v40 = vadd.f32 %v260_v22, %v244_v21  ;;  %v73_v48 = vld [vmem:[%s1866_s0 + $0xa2] sm:$0x7f] }
  0x2c   :  { %v289_v28 = vld [vmem:[%s1866_s0 + $0x29] sm:$0x7f]  ;;  %v290_v30 = vld [vmem:[%s1866_s0 + $0x39] sm:$0x7f]  ;;  %v1078_v31 = vadd.f32 %v287_v26, %v271_v13  ;;  %v1080_v32 = vadd.f32 %v288_v27, %v272_v16  ;;  %v89_v56 = vadd.f32 %v73_v48, %v57_v47  ;;  %v74_v0 = vld [vmem:[%s1866_s0 + $0xb2] sm:$0x7f] }
  0x2d   :  { %v1082_v33 = vadd.f32 %v289_v28, %v273_v17  ;;  %v231_v35 = vld [vmem:[%s1866_s0 + $0x87] sm:$0x7f]  ;;  %v232_v38 = vld [vmem:[%s1866_s0 + $0x97] sm:$0x7f]  ;;  %v1096_v41 = vadd.f32 %v290_v30, %v274_v23  ;;  %v90_v12 = vadd.f32 %v74_v0, %v58_v4  ;;  %v27_v13 = vld [vmem:[%s1866_s0 + $0xc0] sm:$0x7f] }
  0x2e   :  { %v261_v36 = vld [vmem:[%s1866_s0 + $0x68] sm:$0x7f]  ;;  %v319_v42 = vadd.f32 %v1080_v32, %v1078_v31  ;;  %v262_v45 = vld [vmem:[%s1866_s0 + $0x78] sm:$0x7f]  ;;  %v247_v49 = vadd.f32 %v231_v35, %v215_v24  ;;  %v248_v58 = vadd.f32 %v232_v38, %v216_v34  ;;  %v59_v20 = vadd.f32 %v43_v14, %v27_v13  ;;  %v28_v34 = vld [vmem:[%s1866_s0 + $0xd0] sm:$0x7f] }
  0x2f   :  { %v291_v37 = vld [vmem:[%s1866_s0 + $0x49] sm:$0x7f]  ;;  %v292_v46 = vld [vmem:[%s1866_s0 + $0x59] sm:$0x7f]  ;;  %v277_v50 = vadd.f32 %v261_v36, %v245_v25  ;;  %v278_v59 = vadd.f32 %v262_v45, %v246_v39  ;;  %v75_v21 = vld [vmem:[%s1866_s0 + $0xc2] sm:$0x7f] }
  0x30   :  { %v1115_v51 = vadd.f32 %v291_v37, %v275_v29  ;;  %v320_v52 = vadd.f32 %v319_v42, %v1082_v33  ;;  %v105_v53 = vld [vmem:[%s1866_s0 + $0xa3] sm:$0x7f]  ;;  %v1130_v60 = vadd.f32 %v292_v46, %v276_v40  ;;  %v264_v1 = vld [vmem:[%s1866_s0 + $0x98] sm:$0x7f]  ;;  %v91_v30 = vadd.f32 %v75_v21, %v59_v20  ;;  %v44_v38 = vld [vmem:[%s1866_s0 + $0xd1] sm:$0x7f] }
  0x31   :  { %v263_v54 = vld [vmem:[%s1866_s0 + $0x88] sm:$0x7f]  ;;  %v294_v2 = vld [vmem:[%s1866_s0 + $0x79] sm:$0x7f]  ;;  %v121_v3 = vadd.f32 %v105_v53, %v89_v56  ;;  %v280_v15 = vadd.f32 %v264_v1, %v248_v58  ;;  %v76_v39 = vld [vmem:[%s1866_s0 + $0xd2] sm:$0x7f]  ;;  %v60_v47 = vadd.f32 %v44_v38, %v28_v34 }
  0x32   :  { %v293_v55 = vld [vmem:[%s1866_s0 + $0x69] sm:$0x7f]  ;;  %v321_v61 = vadd.f32 %v320_v52, %v1096_v41  ;;  %v279_v5 = vadd.f32 %v263_v54, %v247_v49  ;;  %v106_v9 = vld [vmem:[%s1866_s0 + $0xb3] sm:$0x7f]  ;;  %v310_v16 = vadd.f32 %v294_v2, %v278_v59  ;;  %v45_v58 = vld [vmem:[%s1866_s0 + $0xe1] sm:$0x7f] }
  0x33   :  { %v137_v57 = vld [vmem:[%s1866_s0 + $0xa4] sm:$0x7f]  ;;  %v309_v6 = vadd.f32 %v293_v55, %v277_v50  ;;  %v138_v19 = vld [vmem:[%s1866_s0 + $0xb4] sm:$0x7f]  ;;  %v122_v24 = vadd.f32 %v106_v9, %v90_v12  ;;  %v92_v56 = vadd.f32 %v76_v39, %v60_v47 }
  0x34   :  { %v322_v7 = vadd.f32 %v321_v61, %v1115_v51  ;;  %v169_v8 = vld [vmem:[%s1866_s0 + $0xa5] sm:$0x7f]  ;;  %v153_v11 = vadd.f32 %v137_v57, %v121_v3  ;;  %v296_v22 = vld [vmem:[%s1866_s0 + $0x99] sm:$0x7f]  ;;  %v30_v13 = vld [vmem:[%s1866_s0 + $0xf0] sm:$0x7f] }
  0x35   :  { %v295_v10 = vld [vmem:[%s1866_s0 + $0x89] sm:$0x7f]  ;;  %v170_v29 = vld [vmem:[%s1866_s0 + $0xb5] sm:$0x7f]  ;;  %v154_v36 = vadd.f32 %v138_v19, %v122_v24  ;;  %v312_v40 = vadd.f32 %v296_v22, %v280_v15  ;;  %v29_v57 = vld [vmem:[%s1866_s0 + $0xe0] sm:$0x7f] }
  0x36   :  { %v323_v17 = vadd.f32 %v322_v7, %v1130_v60  ;;  %v201_v18 = vld [vmem:[%s1866_s0 + $0xa6] sm:$0x7f]  ;;  %v185_v23 = vadd.f32 %v169_v8, %v153_v11  ;;  %v311_v26 = vadd.f32 %v295_v10, %v279_v5  ;;  %v202_v45 = vld [vmem:[%s1866_s0 + $0xb6] sm:$0x7f]  ;;  %v61_v2 = vadd.f32 %v45_v58, %v29_v57 }
  0x37   :  { %v107_v25 = vld [vmem:[%s1866_s0 + $0xc3] sm:$0x7f]  ;;  %v186_v49 = vadd.f32 %v170_v29, %v154_v36  ;;  %v234_v50 = vld [vmem:[%s1866_s0 + $0xb7] sm:$0x7f] }
  0x38   :  { %v324_v27 = vadd.f32 %v323_v17, %v309_v6  ;;  %v233_v28 = vld [vmem:[%s1866_s0 + $0xa7] sm:$0x7f]  ;;  %v217_v35 = vadd.f32 %v201_v18, %v185_v23  ;;  %v123_v46 = vadd.f32 %v107_v25, %v91_v30  ;;  %v108_v53 = vld [vmem:[%s1866_s0 + $0xd3] sm:$0x7f]  ;;  %v361_v47 = vld [vmem:[%s1867_s1] sm:$0x7f] }
  0x39   :  { %v139_v37 = vld [vmem:[%s1866_s0 + $0xc4] sm:$0x7f]  ;;  %v218_v62 = vadd.f32 %v202_v45, %v186_v49  ;;  %v266_v63 = vld [vmem:[%s1866_s0 + $0xb8] sm:$0x7f]  ;;  %v124_v7 = vadd.f32 %v108_v53, %v92_v56  ;;  %v46_v14 = vld [vmem:[%s1866_s0 + $0xf1] sm:$0x7f] }
  0x3a   :  { %v325_v42 = vadd.f32 %v324_v27, %v310_v16  ;;  %v265_v43 = vld [vmem:[%s1866_s0 + $0xa8] sm:$0x7f]  ;;  %v249_v48 = vadd.f32 %v233_v28, %v217_v35  ;;  %v155_v55 = vadd.f32 %v139_v37, %v123_v46  ;;  %v140_v1 = vld [vmem:[%s1866_s0 + $0xd4] sm:$0x7f]  ;;  %v62_v19 = vadd.f32 %v46_v14, %v30_v13  ;;  %v383_v14 = vld [vmem:[%s1867_s1 + $0x61] sm:$0x7f] }
  0x3b   :  { %v297_v44 = vld [vmem:[%s1866_s0 + $0xa9] sm:$0x7f]  ;;  %v77_v59 = vld [vmem:[%s1866_s0 + $0xe2] sm:$0x7f]  ;;  %v298_v4 = vld [vmem:[%s1866_s0 + $0xb9] sm:$0x7f]  ;;  %v250_v10 = vadd.f32 %v234_v50, %v218_v62  ;;  %v156_v17 = vadd.f32 %v140_v1, %v124_v7 }
  0x3c   :  { %v171_v52 = vld [vmem:[%s1866_s0 + $0xc5] sm:$0x7f]  ;;  %v326_v54 = vadd.f32 %v325_v42, %v311_v26  ;;  %v281_v61 = vadd.f32 %v265_v43, %v249_v48  ;;  %v172_v11 = vld [vmem:[%s1866_s0 + $0xd5] sm:$0x7f]  ;;  %v93_v12 = vadd.f32 %v77_v59, %v61_v2 }
  0x3d   :  { %v203_v0 = vld [vmem:[%s1866_s0 + $0xc6] sm:$0x7f]  ;;  %v187_v5 = vadd.f32 %v171_v52, %v155_v55  ;;  %v78_v20 = vld [vmem:[%s1866_s0 + $0xf2] sm:$0x7f]  ;;  %v282_v22 = vadd.f32 %v266_v63, %v250_v10  ;;  %v188_v28 = vadd.f32 %v172_v11, %v156_v17  ;;  %v300_v52 = vld [vmem:[%s1866_s0 + $0xd9] sm:$0x7f] }
  0x3e   :  { %v327_v3 = vadd.f32 %v326_v54, %v312_v40  ;;  %v235_v6 = vld [vmem:[%s1866_s0 + $0xc7] sm:$0x7f]  ;;  %v313_v9 = vadd.f32 %v297_v44, %v281_v61  ;;  %v204_v24 = vld [vmem:[%s1866_s0 + $0xd6] sm:$0x7f]  ;;  %v94_v34 = vadd.f32 %v78_v20, %v62_v19  ;;  %v363_v55 = vld [vmem:[%s1867_s1 + $0x20] sm:$0x7f] }
  0x3f   :  { %v109_v8 = vld [vmem:[%s1866_s0 + $0xe3] sm:$0x7f]  ;;  %v219_v16 = vadd.f32 %v203_v0, %v187_v5  ;;  %v110_v26 = vld [vmem:[%s1866_s0 + $0xf3] sm:$0x7f]  ;;  %v314_v36 = vadd.f32 %v298_v4, %v282_v22  ;;  %v220_v43 = vadd.f32 %v204_v24, %v188_v28 }
  0x40   :  { %v328_v15 = vmul.f32 0.01, %v327_v3  ;;  %v141_v18 = vld [vmem:[%s1866_s0 + $0xe4] sm:$0x7f]  ;;  %v331_v21 = vsub.f32 %v313_v9, %v1078_v31  ;;  %v125_v25 = vadd.f32 %v109_v8, %v93_v12  ;;  %v236_v29 = vld [vmem:[%s1866_s0 + $0xd7] sm:$0x7f]  ;;  %v126_v45 = vadd.f32 %v110_v26, %v94_v34 }
  0x41   :  { %v267_v23 = vld [vmem:[%s1866_s0 + $0xc8] sm:$0x7f]  ;;  %v251_v27 = vadd.f32 %v235_v6, %v219_v16  ;;  %v268_v37 = vld [vmem:[%s1866_s0 + $0xd8] sm:$0x7f]  ;;  %v362_v48 = vld [vmem:[%s1867_s1 + $0x10] sm:$0x7f]  ;;  %v336_v50 = vsub.f32 %v314_v36, %v1080_v32  ;;  %v252_v58 = vadd.f32 %v236_v29, %v220_v43 }
  0x42   :  { %330 = vst.msk [vmem:[#allocation2] sm:$0x7f] %vm329_vm0, %v328_v15  ;;  %v299_v31 = vld [vmem:[%s1866_s0 + $0xc9] sm:$0x7f]  ;;  %v332_v35 = vadd.f32 %v331_v21, %v327_v3  ;;  %v157_v38 = vadd.f32 %v141_v18, %v125_v25  ;;  %v142_v40 = vld [vmem:[%s1866_s0 + $0xf4] sm:$0x7f] }
  0x43   :  { %v173_v30 = vld [vmem:[%s1866_s0 + $0xe5] sm:$0x7f]  ;;  %v283_v42 = vadd.f32 %v267_v23, %v251_v27  ;;  %v174_v46 = vld [vmem:[%s1866_s0 + $0xf5] sm:$0x7f]  ;;  %v158_v59 = vadd.f32 %v142_v40, %v126_v45  ;;  %v284_v9 = vadd.f32 %v268_v37, %v252_v58 }
  0x44   :  { %v205_v39 = vld [vmem:[%s1866_s0 + $0xe6] sm:$0x7f]  ;;  %v333_v49 = vmul.f32 0.01, %v332_v35  ;;  %v189_v53 = vadd.f32 %v173_v30, %v157_v38  ;;  %v206_v54 = vld [vmem:[%s1866_s0 + $0xf6] sm:$0x7f]  ;;  %v337_v1 = vadd.f32 %v336_v50, %v332_v35 }
  0x45   :  { %v237_v44 = vld [vmem:[%s1866_s0 + $0xe7] sm:$0x7f]  ;;  %v364_v56 = vld [vmem:[%s1867_s1 + $0x30] sm:$0x7f]  ;;  %v315_v57 = vadd.f32 %v299_v31, %v283_v42  ;;  %v365_v61 = vld [vmem:[%s1867_s1 + $0x40] sm:$0x7f]  ;;  %v190_v11 = vadd.f32 %v174_v46, %v158_v59  ;;  %v316_v23 = vadd.f32 %v300_v52, %v284_v9 }
  0x46   :  { %v269_v32 = vld [vmem:[%s1866_s0 + $0xe8] sm:$0x7f]  ;;  %v366_v62 = vld [vmem:[%s1867_s1 + $0x50] sm:$0x7f]  ;;  %v367_v63 = vld [vmem:[%s1867_s1 + $0x60] sm:$0x7f]  ;;  %v221_v2 = vadd.f32 %v205_v39, %v189_v53 }
  0x47   :  { %v377_v0 = vld [vmem:[%s1867_s1 + $0x1] sm:$0x7f]  ;;  %335 = vst.msk [vmem:[#allocation2 + $0x8] sm:$0x7f] %vm329_vm0, %v333_v49  ;;  %v238_v3 = vld [vmem:[%s1866_s0 + $0xf7] sm:$0x7f]  ;;  %v341_v8 = vsub.f32 %v315_v57, %v1082_v33  ;;  %v222_v24 = vadd.f32 %v206_v54, %v190_v11  ;;  %v399_v35 = vadd.f32 %v383_v14, %v367_v63  ;;  %v346_v40 = vsub.f32 %v316_v23, %v1096_v41 }
  0x48   :  { %v368_v4 = vld [vmem:[%s1867_s1 + $0x70] sm:$0x7f]  ;;  %v379_v6 = vld [vmem:[%s1867_s1 + $0x21] sm:$0x7f]  ;;  %v301_v10 = vld [vmem:[%s1866_s0 + $0xe9] sm:$0x7f]  ;;  %v393_v15 = vadd.f32 %v377_v0, %v361_v47  ;;  %v253_v16 = vadd.f32 %v237_v44, %v221_v2 }
  0x49   :  { %v378_v5 = vld [vmem:[%s1867_s1 + $0x11] sm:$0x7f]  ;;  %v381_v12 = vld [vmem:[%s1867_s1 + $0x41] sm:$0x7f]  ;;  %v338_v33 = vmul.f32 0.01, %v337_v1  ;;  %v395_v21 = vadd.f32 %v379_v6, %v363_v55  ;;  %v342_v22 = vadd.f32 %v341_v8, %v337_v1  ;;  %v254_v42 = vadd.f32 %v238_v3, %v222_v24 }
  0x4a   :  { %v380_v7 = vld [vmem:[%s1867_s1 + $0x31] sm:$0x7f]  ;;  %v270_v17 = vld [vmem:[%s1866_s0 + $0xf8] sm:$0x7f]  ;;  %v369_v18 = vld [vmem:[%s1867_s1 + $0x80] sm:$0x7f]  ;;  %v394_v20 = vadd.f32 %v378_v5, %v362_v48  ;;  %v285_v28 = vadd.f32 %v269_v32, %v253_v16  ;;  %v397_v30 = vadd.f32 %v381_v12, %v365_v61 }
  0x4b   :  { %v382_v13 = vld [vmem:[%s1867_s1 + $0x51] sm:$0x7f]  ;;  %v385_v25 = vld [vmem:[%s1867_s1 + $0x81] sm:$0x7f]  ;;  %v396_v26 = vadd.f32 %v380_v7, %v364_v56  ;;  %340 = vst.msk [vmem:[#allocation2 + $0x10] sm:$0x7f] %vm329_vm0, %v338_v33  ;;  %v347_v53 = vadd.f32 %v346_v40, %v342_v22  ;;  %v286_v54 = vadd.f32 %v270_v17, %v254_v42 }
  0x4c   :  { %v384_v19 = vld [vmem:[%s1867_s1 + $0x71] sm:$0x7f]  ;;  %v409_v27 = vld [vmem:[%s1867_s1 + $0x2] sm:$0x7f]  ;;  %v302_v29 = vld [vmem:[%s1866_s0 + $0xf9] sm:$0x7f]  ;;  %v398_v34 = vadd.f32 %v382_v13, %v366_v62  ;;  %v317_v46 = vadd.f32 %v301_v10, %v285_v28  ;;  %v401_v41 = vadd.f32 %v385_v25, %v369_v18 }
  0x4d   :  { %v410_v31 = vld [vmem:[%s1867_s1 + $0x12] sm:$0x7f]  ;;  %v411_v36 = vld [vmem:[%s1867_s1 + $0x22] sm:$0x7f]  ;;  %v343_v39 = vmul.f32 0.01, %v342_v22  ;;  %v400_v43 = vadd.f32 %v384_v19, %v368_v4  ;;  %v425_v50 = vadd.f32 %v409_v27, %v393_v15  ;;  %v318_v4 = vadd.f32 %v302_v29, %v286_v54 }
  0x4e   :  { %v412_v37 = vld [vmem:[%s1867_s1 + $0x32] sm:$0x7f]  ;;  %v413_v38 = vld [vmem:[%s1867_s1 + $0x42] sm:$0x7f]  ;;  %v426_v52 = vadd.f32 %v410_v31, %v394_v20  ;;  %v427_v56 = vadd.f32 %v411_v36, %v395_v21  ;;  %v351_v59 = vsub.f32 %v317_v46, %v1115_v51  ;;  %v348_v3 = vmul.f32 0.01, %v347_v53 }
  0x4f   :  { %v414_v44 = vld [vmem:[%s1867_s1 + $0x52] sm:$0x7f]  ;;  %v415_v45 = vld [vmem:[%s1867_s1 + $0x62] sm:$0x7f]  ;;  %345 = vst.msk [vmem:[#allocation2 + $0x18] sm:$0x7f] %vm329_vm0, %v343_v39  ;;  %v428_v57 = vadd.f32 %v412_v37, %v396_v26  ;;  %v429_v61 = vadd.f32 %v413_v38, %v397_v30  ;;  %v356_v14 = vsub.f32 %v318_v4, %v1130_v60 }
  0x50   :  { %v370_v47 = vld [vmem:[%s1867_s1 + $0x90] sm:$0x7f]  ;;  %v417_v55 = vld [vmem:[%s1867_s1 + $0x82] sm:$0x7f]  ;;  %v430_v62 = vadd.f32 %v414_v44, %v398_v34  ;;  %v431_v63 = vadd.f32 %v415_v45, %v399_v35  ;;  %v352_v8 = vadd.f32 %v351_v59, %v347_v53  ;;  %350 = vst.msk [vmem:[#allocation2 + $0x20] sm:$0x7f] %vm329_vm0, %v348_v3 }
  0x51   :  { %v386_v48 = vld [vmem:[%s1867_s1 + $0x91] sm:$0x7f]  ;;  %v441_v58 = vld [vmem:[%s1867_s1 + $0x3] sm:$0x7f]  ;;  %v433_v21 = vadd.f32 %v417_v55, %v401_v41 }
  0x52   :  { %v416_v49 = vld [vmem:[%s1867_s1 + $0x72] sm:$0x7f]  ;;  %v443_v0 = vld [vmem:[%s1867_s1 + $0x23] sm:$0x7f]  ;;  %v402_v5 = vadd.f32 %v386_v48, %v370_v47  ;;  %v457_v11 = vadd.f32 %v441_v58, %v425_v50  ;;  %v353_v20 = vmul.f32 0.01, %v352_v8  ;;  %v357_v25 = vadd.f32 %v356_v14, %v352_v8 }
  0x53   :  { %v442_v32 = vld [vmem:[%s1867_s1 + $0x13] sm:$0x7f]  ;;  %v445_v2 = vld [vmem:[%s1867_s1 + $0x43] sm:$0x7f]  ;;  %v432_v6 = vadd.f32 %v416_v49, %v400_v43  ;;  %v459_v15 = vadd.f32 %v443_v0, %v427_v56 }
  0x54   :  { %v444_v1 = vld [vmem:[%s1867_s1 + $0x33] sm:$0x7f]  ;;  %v447_v7 = vld [vmem:[%s1867_s1 + $0x63] sm:$0x7f]  ;;  %v458_v12 = vadd.f32 %v442_v32, %v426_v52  ;;  %v461_v16 = vadd.f32 %v445_v2, %v429_v61  ;;  %355 = vst.msk [vmem:[#allocation2 + $0x28] sm:$0x7f] %vm329_vm0, %v353_v20 }
  0x55   :  { %v446_v51 = vld [vmem:[%s1867_s1 + $0x53] sm:$0x7f]  ;;  %v473_v13 = vld [vmem:[%s1867_s1 + $0x4] sm:$0x7f]  ;;  %v460_v33 = vadd.f32 %v444_v1, %v428_v57  ;;  %v463_v23 = vadd.f32 %v447_v7, %v431_v63  ;;  %v358_v42 = vmul.f32 0.01, %v357_v25 }
  0x56   :  { %v418_v9 = vld [vmem:[%s1867_s1 + $0x92] sm:$0x7f]  ;;  %v475_v18 = vld [vmem:[%s1867_s1 + $0x24] sm:$0x7f]  ;;  %v462_v22 = vadd.f32 %v446_v51, %v430_v62  ;;  %v489_v30 = vadd.f32 %v473_v13, %v457_v11 }
  0x57   :  { %v448_v10 = vld [vmem:[%s1867_s1 + $0x73] sm:$0x7f]  ;;  %v477_v60 = vld [vmem:[%s1867_s1 + $0x44] sm:$0x7f]  ;;  %v434_v26 = vadd.f32 %v418_v9, %v402_v5  ;;  %v491_v36 = vadd.f32 %v475_v18, %v459_v15  ;;  %360 = vst.msk [vmem:[#allocation2 + $0x30] sm:$0x7f] %vm329_vm0, %v358_v42 }
  0x58   :  { %v474_v17 = vld [vmem:[%s1867_s1 + $0x14] sm:$0x7f]  ;;  %v449_v27 = vld [vmem:[%s1867_s1 + $0x83] sm:$0x7f]  ;;  %v464_v28 = vadd.f32 %v448_v10, %v432_v6  ;;  %v493_v38 = vadd.f32 %v477_v60, %v461_v16 }
  0x59   :  { %v476_v19 = vld [vmem:[%s1867_s1 + $0x34] sm:$0x7f]  ;;  %v479_v29 = vld [vmem:[%s1867_s1 + $0x64] sm:$0x7f]  ;;  %v490_v35 = vadd.f32 %v474_v17, %v458_v12  ;;  %v465_v46 = vadd.f32 %v449_v27, %v433_v21 }
  0x5a   :  { %v478_v24 = vld [vmem:[%s1867_s1 + $0x54] sm:$0x7f]  ;;  %v492_v37 = vadd.f32 %v476_v19, %v460_v33  ;;  %v505_v39 = vld [vmem:[%s1867_s1 + $0x5] sm:$0x7f]  ;;  %v495_v47 = vadd.f32 %v479_v29, %v463_v23 }
  0x5b   :  { %v450_v31 = vld [vmem:[%s1867_s1 + $0x93] sm:$0x7f]  ;;  %v494_v43 = vadd.f32 %v478_v24, %v462_v22  ;;  %v507_v44 = vld [vmem:[%s1867_s1 + $0x25] sm:$0x7f]  ;;  %v521_v49 = vadd.f32 %v505_v39, %v489_v30 }
  0x5c   :  { %v480_v34 = vld [vmem:[%s1867_s1 + $0x74] sm:$0x7f]  ;;  %v509_v48 = vld [vmem:[%s1867_s1 + $0x45] sm:$0x7f]  ;;  %v523_v54 = vadd.f32 %v507_v44, %v491_v36  ;;  %v466_v57 = vadd.f32 %v450_v31, %v434_v26 }
  0x5d   :  { %v506_v40 = vld [vmem:[%s1867_s1 + $0x15] sm:$0x7f]  ;;  %v481_v52 = vld [vmem:[%s1867_s1 + $0x84] sm:$0x7f]  ;;  %v525_v56 = vadd.f32 %v509_v48, %v493_v38  ;;  %v496_v58 = vadd.f32 %v480_v34, %v464_v28 }
  0x5e   :  { %v508_v45 = vld [vmem:[%s1867_s1 + $0x35] sm:$0x7f]  ;;  %v522_v50 = vadd.f32 %v506_v40, %v490_v35  ;;  %v511_v53 = vld [vmem:[%s1867_s1 + $0x65] sm:$0x7f]  ;;  %v497_v5 = vadd.f32 %v481_v52, %v465_v46 }
  0x5f   :  { %v510_v41 = vld [vmem:[%s1867_s1 + $0x55] sm:$0x7f]  ;;  %v524_v55 = vadd.f32 %v508_v45, %v492_v37  ;;  %v537_v32 = vld [vmem:[%s1867_s1 + $0x6] sm:$0x7f]  ;;  %v527_v7 = vadd.f32 %v511_v53, %v495_v47 }
  0x60   :  { %v538_v59 = vld [vmem:[%s1867_s1 + $0x16] sm:$0x7f]  ;;  %v539_v61 = vld [vmem:[%s1867_s1 + $0x26] sm:$0x7f]  ;;  %v526_v63 = vadd.f32 %v510_v41, %v494_v43  ;;  %v553_v2 = vadd.f32 %v537_v32, %v521_v49 }
  0x61   :  { %v482_v62 = vld [vmem:[%s1867_s1 + $0x94] sm:$0x7f]  ;;  %v541_v1 = vld [vmem:[%s1867_s1 + $0x46] sm:$0x7f]  ;;  %v554_v3 = vadd.f32 %v538_v59, %v522_v50  ;;  %v555_v4 = vadd.f32 %v539_v61, %v523_v54 }
  0x62   :  { %v540_v0 = vld [vmem:[%s1867_s1 + $0x36] sm:$0x7f]  ;;  %v513_v51 = vld [vmem:[%s1867_s1 + $0x85] sm:$0x7f]  ;;  %v557_v11 = vadd.f32 %v541_v1, %v525_v56  ;;  %v498_v14 = vadd.f32 %v482_v62, %v466_v57 }
  0x63   :  { %v512_v6 = vld [vmem:[%s1867_s1 + $0x75] sm:$0x7f]  ;;  %v556_v9 = vadd.f32 %v540_v0, %v524_v55  ;;  %v543_v10 = vld [vmem:[%s1867_s1 + $0x66] sm:$0x7f]  ;;  %v529_v25 = vadd.f32 %v513_v51, %v497_v5 }
  0x64   :  { %v542_v8 = vld [vmem:[%s1867_s1 + $0x56] sm:$0x7f]  ;;  %v569_v12 = vld [vmem:[%s1867_s1 + $0x7] sm:$0x7f]  ;;  %v528_v20 = vadd.f32 %v512_v6, %v496_v58  ;;  %v559_v26 = vadd.f32 %v543_v10, %v527_v7 }
  0x65   :  { %v570_v13 = vld [vmem:[%s1867_s1 + $0x17] sm:$0x7f]  ;;  %v571_v15 = vld [vmem:[%s1867_s1 + $0x27] sm:$0x7f]  ;;  %v585_v17 = vadd.f32 %v569_v12, %v553_v2  ;;  %v558_v23 = vadd.f32 %v542_v8, %v526_v63 }
  0x66   :  { %v572_v33 = vld [vmem:[%s1867_s1 + $0x37] sm:$0x7f]  ;;  %v573_v16 = vld [vmem:[%s1867_s1 + $0x47] sm:$0x7f]  ;;  %v586_v18 = vadd.f32 %v570_v13, %v554_v3  ;;  %v587_v60 = vadd.f32 %v571_v15, %v555_v4  ;;  %v371_v3 = vld [vmem:[%s1867_s1 + $0xa0] sm:$0x7f] }
  0x67   :  { %v514_v19 = vld [vmem:[%s1867_s1 + $0x95] sm:$0x7f]  ;;  %v545_v22 = vld [vmem:[%s1867_s1 + $0x86] sm:$0x7f]  ;;  %v588_v24 = vadd.f32 %v572_v33, %v556_v9  ;;  %v589_v29 = vadd.f32 %v573_v16, %v557_v11 }
  0x68   :  { %v544_v21 = vld [vmem:[%s1867_s1 + $0x76] sm:$0x7f]  ;;  %v575_v31 = vld [vmem:[%s1867_s1 + $0x67] sm:$0x7f]  ;;  %v530_v37 = vadd.f32 %v514_v19, %v498_v14  ;;  %v561_v48 = vadd.f32 %v545_v22, %v529_v25 }
  0x69   :  { %v574_v27 = vld [vmem:[%s1867_s1 + $0x57] sm:$0x7f]  ;;  %v601_v28 = vld [vmem:[%s1867_s1 + $0x8] sm:$0x7f]  ;;  %v560_v43 = vadd.f32 %v544_v21, %v528_v20  ;;  %v591_v41 = vadd.f32 %v575_v31, %v559_v26  ;;  %v387_v4 = vld [vmem:[%s1867_s1 + $0xa1] sm:$0x7f] }
  0x6a   :  { %v602_v30 = vld [vmem:[%s1867_s1 + $0x18] sm:$0x7f]  ;;  %v603_v34 = vld [vmem:[%s1867_s1 + $0x28] sm:$0x7f]  ;;  %v617_v36 = vadd.f32 %v601_v28, %v585_v17  ;;  %v590_v45 = vadd.f32 %v574_v27, %v558_v23  ;;  %v403_v51 = vadd.f32 %v387_v4, %v371_v3  ;;  %v372_v33 = vld [vmem:[%s1867_s1 + $0xb0] sm:$0x7f] }
  0x6b   :  { %v604_v35 = vld [vmem:[%s1867_s1 + $0x38] sm:$0x7f]  ;;  %v605_v38 = vld [vmem:[%s1867_s1 + $0x48] sm:$0x7f]  ;;  %v618_v39 = vadd.f32 %v602_v30, %v586_v18  ;;  %v619_v40 = vadd.f32 %v603_v34, %v587_v60  ;;  %v388_v21 = vld [vmem:[%s1867_s1 + $0xb1] sm:$0x7f] }
  0x6c   :  { %v546_v42 = vld [vmem:[%s1867_s1 + $0x96] sm:$0x7f]  ;;  %v620_v47 = vadd.f32 %v604_v35, %v588_v24  ;;  %v633_v49 = vld [vmem:[%s1867_s1 + $0x9] sm:$0x7f]  ;;  %v621_v53 = vadd.f32 %v605_v38, %v589_v29  ;;  %v419_v7 = vld [vmem:[%s1867_s1 + $0xa2] sm:$0x7f]  ;;  %v404_v25 = vadd.f32 %v388_v21, %v372_v33 }
  0x6d   :  { %v576_v44 = vld [vmem:[%s1867_s1 + $0x77] sm:$0x7f]  ;;  %v635_v52 = vld [vmem:[%s1867_s1 + $0x29] sm:$0x7f]  ;;  %v1589_v55 = vadd.f32 %v633_v49, %v617_v36  ;;  %v562_v58 = vadd.f32 %v546_v42, %v530_v37  ;;  %v435_v15 = vadd.f32 %v419_v7, %v403_v51  ;;  %v373_v36 = vld [vmem:[%s1867_s1 + $0xc0] sm:$0x7f] }
  0x6e   :  { %v606_v46 = vld [vmem:[%s1867_s1 + $0x58] sm:$0x7f]  ;;  %v1593_v57 = vadd.f32 %v635_v52, %v619_v40  ;;  %v577_v32 = vld [vmem:[%s1867_s1 + $0x87] sm:$0x7f]  ;;  %v592_v63 = vadd.f32 %v576_v44, %v560_v43 }
  0x6f   :  { %v634_v50 = vld [vmem:[%s1867_s1 + $0x19] sm:$0x7f]  ;;  %v607_v59 = vld [vmem:[%s1867_s1 + $0x68] sm:$0x7f]  ;;  %v622_v0 = vadd.f32 %v606_v46, %v590_v45  ;;  %v593_v8 = vadd.f32 %v577_v32, %v561_v48  ;;  %v420_v22 = vld [vmem:[%s1867_s1 + $0xb2] sm:$0x7f] }
  0x70   :  { %v636_v54 = vld [vmem:[%s1867_s1 + $0x39] sm:$0x7f]  ;;  %v1591_v56 = vadd.f32 %v634_v50, %v618_v39  ;;  %v637_v61 = vld [vmem:[%s1867_s1 + $0x49] sm:$0x7f]  ;;  %v623_v9 = vadd.f32 %v607_v59, %v591_v41  ;;  %v436_v35 = vadd.f32 %v420_v22, %v404_v25  ;;  %v389_v37 = vld [vmem:[%s1867_s1 + $0xc1] sm:$0x7f] }
  0x71   :  { %v578_v62 = vld [vmem:[%s1867_s1 + $0x97] sm:$0x7f]  ;;  %v1607_v1 = vadd.f32 %v636_v54, %v620_v47  ;;  %v1626_v10 = vadd.f32 %v637_v61, %v621_v53  ;;  %v451_v12 = vld [vmem:[%s1867_s1 + $0xa3] sm:$0x7f]  ;;  %v405_v45 = vadd.f32 %v389_v37, %v373_v36 }
  0x72   :  { %v665_v2 = vadd.f32 %v1591_v56, %v1589_v55  ;;  %v608_v5 = vld [vmem:[%s1867_s1 + $0x78] sm:$0x7f]  ;;  %v609_v13 = vld [vmem:[%s1867_s1 + $0x88] sm:$0x7f]  ;;  %v594_v16 = vadd.f32 %v578_v62, %v562_v58  ;;  %v467_v24 = vadd.f32 %v451_v12, %v435_v15  ;;  %v374_v58 = vld [vmem:[%s1867_s1 + $0xd0] sm:$0x7f] }
  0x73   :  { %v638_v6 = vld [vmem:[%s1867_s1 + $0x59] sm:$0x7f]  ;;  %v639_v14 = vld [vmem:[%s1867_s1 + $0x69] sm:$0x7f]  ;;  %v624_v17 = vadd.f32 %v608_v5, %v592_v63  ;;  %v625_v26 = vadd.f32 %v609_v13, %v593_v8  ;;  %v421_v38 = vld [vmem:[%s1867_s1 + $0xc2] sm:$0x7f] }
  0x74   :  { %v666_v11 = vadd.f32 %v665_v2, %v1593_v57  ;;  %v1641_v18 = vadd.f32 %v638_v6, %v622_v0  ;;  %v483_v20 = vld [vmem:[%s1867_s1 + $0xa4] sm:$0x7f]  ;;  %v610_v23 = vld [vmem:[%s1867_s1 + $0x98] sm:$0x7f]  ;;  %v655_v31 = vadd.f32 %v639_v14, %v623_v9  ;;  %v437_v54 = vadd.f32 %v421_v38, %v405_v45  ;;  %v390_v32 = vld [vmem:[%s1867_s1 + $0xd1] sm:$0x7f] }
  0x75   :  { %v640_v60 = vld [vmem:[%s1867_s1 + $0x79] sm:$0x7f]  ;;  %v641_v27 = vld [vmem:[%s1867_s1 + $0x89] sm:$0x7f]  ;;  %v499_v34 = vadd.f32 %v483_v20, %v467_v24  ;;  %v626_v39 = vadd.f32 %v610_v23, %v594_v16  ;;  %v406_v0 = vadd.f32 %v390_v32, %v374_v58  ;;  %v422_v2 = vld [vmem:[%s1867_s1 + $0xd2] sm:$0x7f] }
  0x76   :  { %v667_v19 = vadd.f32 %v666_v11, %v1607_v1  ;;  %v515_v29 = vld [vmem:[%s1867_s1 + $0xa5] sm:$0x7f]  ;;  %v452_v30 = vld [vmem:[%s1867_s1 + $0xb3] sm:$0x7f]  ;;  %v656_v40 = vadd.f32 %v640_v60, %v624_v17  ;;  %v657_v50 = vadd.f32 %v641_v27, %v625_v26 }
  0x77   :  { %v547_v43 = vld [vmem:[%s1867_s1 + $0xa6] sm:$0x7f]  ;;  %v484_v44 = vld [vmem:[%s1867_s1 + $0xb4] sm:$0x7f]  ;;  %v531_v47 = vadd.f32 %v515_v29, %v499_v34  ;;  %v468_v41 = vadd.f32 %v452_v30, %v436_v35  ;;  %v438_v13 = vadd.f32 %v422_v2, %v406_v0 }
  0x78   :  { %v668_v28 = vadd.f32 %v667_v19, %v1626_v10  ;;  %v642_v46 = vld [vmem:[%s1867_s1 + $0x99] sm:$0x7f]  ;;  %v579_v48 = vld [vmem:[%s1867_s1 + $0xa7] sm:$0x7f]  ;;  %v375_v14 = vld [vmem:[%s1867_s1 + $0xe0] sm:$0x7f] }
  0x79   :  { %v453_v49 = vld [vmem:[%s1867_s1 + $0xc3] sm:$0x7f]  ;;  %v516_v53 = vld [vmem:[%s1867_s1 + $0xb5] sm:$0x7f]  ;;  %v563_v59 = vadd.f32 %v547_v43, %v531_v47  ;;  %v500_v62 = vadd.f32 %v484_v44, %v468_v41  ;;  %v658_v3 = vadd.f32 %v642_v46, %v626_v39 }
  0x7a   :  { %v669_v42 = vadd.f32 %v668_v28, %v1641_v18  ;;  %v611_v61 = vld [vmem:[%s1867_s1 + $0xa8] sm:$0x7f]  ;;  %v548_v6 = vld [vmem:[%s1867_s1 + $0xb6] sm:$0x7f]  ;;  %v469_v51 = vadd.f32 %v453_v49, %v437_v54  ;;  %v391_v17 = vld [vmem:[%s1867_s1 + $0xe1] sm:$0x7f] }
  0x7b   :  { %v485_v63 = vld [vmem:[%s1867_s1 + $0xc4] sm:$0x7f]  ;;  %v454_v7 = vld [vmem:[%s1867_s1 + $0xd3] sm:$0x7f]  ;;  %v595_v8 = vadd.f32 %v579_v48, %v563_v59  ;;  %v532_v9 = vadd.f32 %v516_v53, %v500_v62  ;;  %v407_v24 = vadd.f32 %v391_v17, %v375_v14 }
  0x7c   :  { %v670_v52 = vadd.f32 %v669_v42, %v655_v31  ;;  %v643_v5 = vld [vmem:[%s1867_s1 + $0xa9] sm:$0x7f]  ;;  %v580_v11 = vld [vmem:[%s1867_s1 + $0xb7] sm:$0x7f]  ;;  %v501_v33 = vadd.f32 %v485_v63, %v469_v51  ;;  %v423_v19 = vld [vmem:[%s1867_s1 + $0xe2] sm:$0x7f]  ;;  %v470_v60 = vadd.f32 %v454_v7, %v438_v13 }
  0x7d   :  { %v517_v12 = vld [vmem:[%s1867_s1 + $0xc5] sm:$0x7f]  ;;  %v486_v16 = vld [vmem:[%s1867_s1 + $0xd4] sm:$0x7f]  ;;  %v627_v20 = vadd.f32 %v611_v61, %v595_v8  ;;  %v564_v21 = vadd.f32 %v548_v6, %v532_v9  ;;  %v439_v37 = vadd.f32 %v423_v19, %v407_v24 }
  0x7e   :  { %v671_v4 = vadd.f32 %v670_v52, %v656_v40  ;;  %v612_v22 = vld [vmem:[%s1867_s1 + $0xb8] sm:$0x7f]  ;;  %v549_v23 = vld [vmem:[%s1867_s1 + $0xc6] sm:$0x7f]  ;;  %v533_v27 = vadd.f32 %v517_v12, %v501_v33  ;;  %v502_v36 = vadd.f32 %v486_v16, %v470_v60  ;;  %v376_v38 = vld [vmem:[%s1867_s1 + $0xf0] sm:$0x7f] }
  0x7f   :  { %v644_v26 = vld [vmem:[%s1867_s1 + $0xb9] sm:$0x7f]  ;;  %v581_v31 = vld [vmem:[%s1867_s1 + $0xc7] sm:$0x7f]  ;;  %v659_v30 = vadd.f32 %v643_v5, %v627_v20  ;;  %v596_v34 = vadd.f32 %v580_v11, %v564_v21  ;;  %v392_v39 = vld [vmem:[%s1867_s1 + $0xf1] sm:$0x7f] }
  0x80   :  { %v672_v15 = vadd.f32 %v671_v4, %v657_v50  ;;  %v518_v28 = vld [vmem:[%s1867_s1 + $0xd5] sm:$0x7f]  ;;  %v455_v29 = vld [vmem:[%s1867_s1 + $0xe3] sm:$0x7f]  ;;  %v565_v43 = vadd.f32 %v549_v23, %v533_v27  ;;  %v408_v46 = vadd.f32 %v392_v39, %v376_v38 }
  0x81   :  { %v613_v35 = vld [vmem:[%s1867_s1 + $0xc8] sm:$0x7f]  ;;  %v424_v40 = vld [vmem:[%s1867_s1 + $0xf2] sm:$0x7f]  ;;  %v676_v47 = vsub.f32 %v659_v30, %v1589_v55  ;;  %v628_v48 = vadd.f32 %v612_v22, %v596_v34  ;;  %v534_v49 = vadd.f32 %v518_v28, %v502_v36  ;;  %v471_v52 = vadd.f32 %v455_v29, %v439_v37 }
  0x82   :  { %v673_v25 = vadd.f32 %v672_v15, %v658_v3  ;;  %v550_v44 = vld [vmem:[%s1867_s1 + $0xd6] sm:$0x7f]  ;;  %v487_v45 = vld [vmem:[%s1867_s1 + $0xe4] sm:$0x7f]  ;;  %v597_v54 = vadd.f32 %v581_v31, %v565_v43  ;;  %v440_v59 = vadd.f32 %v424_v40, %v408_v46 }
  0x83   :  { %v645_v41 = vld [vmem:[%s1867_s1 + $0xc9] sm:$0x7f]  ;;  %v582_v50 = vld [vmem:[%s1867_s1 + $0xd7] sm:$0x7f]  ;;  %v660_v62 = vadd.f32 %v644_v26, %v628_v48  ;;  %v566_v63 = vadd.f32 %v550_v44, %v534_v49  ;;  %v503_v0 = vadd.f32 %v487_v45, %v471_v52 }
  0x84   :  { %v674_v42 = vmul.f32 0.01, %v673_v25  ;;  %v456_v53 = vld [vmem:[%s1867_s1 + $0xf3] sm:$0x7f]  ;;  %v519_v58 = vld [vmem:[%s1867_s1 + $0xe5] sm:$0x7f]  ;;  %v677_v61 = vadd.f32 %v676_v47, %v673_v25 }
  0x85   :  { %v614_v55 = vld [vmem:[%s1867_s1 + $0xd8] sm:$0x7f]  ;;  %v551_v32 = vld [vmem:[%s1867_s1 + $0xe6] sm:$0x7f] }
  0x86   :  { %675 = vst.msk [vmem:[#allocation4] sm:$0x7f] %vm329_vm0, %v674_v42  ;;  %v488_v2 = vld [vmem:[%s1867_s1 + $0xf4] sm:$0x7f] }
  0x87   :  { %10 = vsyncpa [#allocation5], 0  ;;  %v629_v3 = vadd.f32 %v613_v35, %v597_v54  ;;  %v472_v4 = vadd.f32 %v456_v53, %v440_v59  ;;  %s742_s5 = scalar_lea.vmem %s712_s29, 896  ;;  %p747_p1 = scmp.lt.s32.totalorder %s712_s29, %s712_s29 }
  0x88   :  { %p743_p0 = scmp.ne.s32.totalorder %s712_s29, %s742_s5  ;;  %p748_p2 = scmp.lt.s32.totalorder %s742_s5, %s742_s5 }
  0x8a   :  { %p749_p3 = por %p748_p2, %p747_p1 }
  0x8c   :  { %p750_p4 = pnand %p749_p3, %p743_p0 }
  0x8e   :  { %753 = shalt.err (!%p750_p4)
}
  0x8f   :  { %s754_s8 = scalar_lea.hbm %s1868_s2, 896 }
  0x90   :  { %p755_p5 = scmp.ne.s32.totalorder %s1868_s2, %s754_s8  ;;  %p758_p6 = scmp.lt.u32.totalorder %s754_s8, %s1868_s2 }
  0x92   :  { %p760_p7 = pnand %p758_p6, %p755_p5 }
  0x94   :  { %763 = shalt.err (!%p760_p7)
}
  0x95   :  { %s791_s13 = smov 128   ;;  %s792_s14 = smov 8   ;;  %v678_v5 = vmul.f32 0.01, %v677_v61  ;;  %v681_v6 = vsub.f32 %v660_v62, %v1591_v56  ;;  %v598_v51 = vadd.f32 %v582_v50, %v566_v63  ;;  %v535_v7 = vadd.f32 %v519_v58, %v503_v0  ;;  %v520_v8 = vld [vmem:[%s1867_s1 + $0xf5] sm:$0x7f] }
  0x96   :  { %717 = dma.vmem_to_hbm [thread:$0]  %s712_s29, 896, %s1868_s2, [#allocation3], %s791_s13, %s791_s13, %s792_s14   ;;  %v661_v9 = vadd.f32 %v645_v41, %v629_v3  ;;  %v504_v13 = vadd.f32 %v488_v2, %v472_v4 }
  0x97   :  { %v646_v11 = vld [vmem:[%s1867_s1 + $0xd9] sm:$0x7f]  ;;  %v583_v12 = vld [vmem:[%s1867_s1 + $0xe7] sm:$0x7f]  ;;  %680 = vst.msk [vmem:[#allocation4 + $0x8] sm:$0x7f] %vm329_vm0, %v678_v5  ;;  %v682_v14 = vadd.f32 %v681_v6, %v677_v61  ;;  %v630_v56 = vadd.f32 %v614_v55, %v598_v51  ;;  %v567_v15 = vadd.f32 %v551_v32, %v535_v7 }
  0x98   :  { %v552_v33 = vld [vmem:[%s1867_s1 + $0xf6] sm:$0x7f]  ;;  %v686_v16 = vsub.f32 %v661_v9, %v1593_v57  ;;  %v615_v17 = vld [vmem:[%s1867_s1 + $0xe8] sm:$0x7f]  ;;  %v536_v19 = vadd.f32 %v520_v8, %v504_v13  ;;  %s793_s6 = smov [#allocation4]  }
  0x99   :  { %v683_v20 = vmul.f32 0.01, %v682_v14  ;;  %v662_v21 = vadd.f32 %v646_v11, %v630_v56  ;;  %v599_v22 = vadd.f32 %v583_v12, %v567_v15  ;;  %v584_v23 = vld [vmem:[%s1867_s1 + $0xf7] sm:$0x7f]  ;;  %v647_v24 = vld [vmem:[%s1867_s1 + $0xe9] sm:$0x7f] }
  0x9a   :  { %v687_v60 = vadd.f32 %v686_v16, %v682_v14  ;;  %v568_v25 = vadd.f32 %v552_v33, %v536_v19  ;;  %v616_v27 = vld [vmem:[%s1867_s1 + $0xf8] sm:$0x7f]  ;;  %s723_s7 = sshll.u32 %s793_s6, 4  ;;  %s724_s7 = int_to_ptr.vmem [resolvable:$true] %s723_s7 }
  0x9b   :  { %685 = vst.msk [vmem:[#allocation4 + $0x10] sm:$0x7f] %vm329_vm0, %v683_v20  ;;  %v691_v57 = vsub.f32 %v662_v21, %v1607_v1  ;;  %v631_v26 = vadd.f32 %v615_v17, %v599_v22  ;;  %v648_v34 = vld [vmem:[%s1867_s1 + $0xf9] sm:$0x7f]  ;;  %s764_s1 = scalar_lea.vmem %s724_s7, 896  ;;  %p769_p9 = scmp.lt.s32.totalorder %s724_s7, %s724_s7 }
  0x9c   :  { %v688_v31 = vmul.f32 0.01, %v687_v60  ;;  %v600_v28 = vadd.f32 %v584_v23, %v568_v25  ;;  %p765_p8 = scmp.ne.s32.totalorder %s724_s7, %s764_s1  ;;  %p770_p10 = scmp.lt.s32.totalorder %s764_s1, %s764_s1 }
  0x9d   :  { %v692_v29 = vadd.f32 %v691_v57, %v687_v60  ;;  %v663_v30 = vadd.f32 %v647_v24, %v631_v26 }
  0x9e   :  { %690 = vst.msk [vmem:[#allocation4 + $0x18] sm:$0x7f] %vm329_vm0, %v688_v31  ;;  %v632_v35 = vadd.f32 %v616_v27, %v600_v28  ;;  %p771_p11 = por %p770_p10, %p769_p9 }
  0x9f   :  { %v693_v36 = vmul.f32 0.01, %v692_v29  ;;  %v696_v37 = vsub.f32 %v663_v30, %v1626_v10 }
  0xa0   :  { %v664_v1 = vadd.f32 %v648_v34, %v632_v35  ;;  %p772_p12 = pnand %p771_p11, %p765_p8 }
  0xa1   :  { %695 = vst.msk [vmem:[#allocation4 + $0x20] sm:$0x7f] %vm329_vm0, %v693_v36  ;;  %v697_v38 = vadd.f32 %v696_v37, %v692_v29 }
  0xa2   :  { %v701_v39 = vsub.f32 %v664_v1, %v1641_v18 }
  0xa3   :  { %v698_v40 = vmul.f32 0.01, %v697_v38 }
  0xa4   :  { %v702_v42 = vadd.f32 %v701_v39, %v697_v38 }
  0xa5   :  { %700 = vst.msk [vmem:[#allocation4 + $0x28] sm:$0x7f] %vm329_vm0, %v698_v40 }
  0xa6   :  { %v703_v43 = vmul.f32 0.01, %v702_v42 }
  0xa8   :  { %705 = vst.msk [vmem:[#allocation4 + $0x30] sm:$0x7f] %vm329_vm0, %v703_v43 }
  0xa9   :  { %775 = shalt.err (!%p772_p12)
}
  0xaa   :  { %s776_s10 = scalar_lea.hbm %s1869_s3, 896 }
  0xab   :  { %p777_p13 = scmp.ne.s32.totalorder %s1869_s3, %s776_s10  ;;  %p780_p0 = scmp.lt.u32.totalorder %s776_s10, %s1869_s3 }
  0xad   :  { %p782_p1 = pnand %p780_p0, %p777_p13 }
  0xaf   :  { %785 = shalt.err (!%p782_p1)
}
  0xb0   :  { %729 = dma.vmem_to_hbm [thread:$0]  %s724_s7, 896, %s1869_s3, [#allocation5], %s791_s13, %s791_s13, %s792_s14  }
  0xb1   :  { %786 = dma.done.wait [#allocation3], 896  }
  0xb2   :  { %787 = vsyncadd [#allocation3], 4294966400 }
  0xb3   :  { %788 = dma.done.wait [#allocation5], 896  }
  0xb4   :  { %789 = vsyncadd [#allocation5], 4294966400 }
  0xb5   :  { %736 = vsyncpa [#allocation3], 1 }
  0xb6   :  { %737 = vsyncpa [#allocation5], 1 }

</bundles_post_ra>
